<compile_context>
chip_gen: v7x
topology: tpu7x:2x2x1
jax: 0.10.0
libtpu: 0.0.40
codegen_flags: <defaults>
</compile_context>

<pallas_src>
import functools
import math

import jax
import jax.numpy as jnp
from jax.experimental import pallas as pl
from jax.experimental.pallas import tpu as pltpu

LRELU_SLOPE = 0.2
BN_EPS = 1e-5
VMEM_LIMIT = 32 * 1024 * 1024  # safe on v5e/v6e (128 MiB phys) and v7x (64 MiB)


def _round_up(x, m):
    return ((x + m - 1) // m) * m


def _leaky_relu(x):
    # slope in (0, 1)  =>  leaky_relu(x) == max(x, slope * x)   (single VPU op)
    return jnp.maximum(x, LRELU_SLOPE * x)


def _conv1_compute_dtype():
    """bf16 conv1/lrelu on chips whose VPU has native bf16 (v6e/v7x), else f32."""
    try:
        kind = jax.devices()[0].device_kind.lower()
    except Exception:  # pragma: no cover - defensive
        return jnp.float32
    if any(tag in kind for tag in ("v6", "v7", "trillium")):
        return jnp.bfloat16
    return jnp.float32


# ---------------------------------------------------------------------------
# Kernels (channel-major: activation tiles are (C, tm), lane axis = pixels)
# ---------------------------------------------------------------------------

def _conv1_conv2(x_ref, w1_ref, b1_ref, w2_ref, compute_dtype):
    """y2 = conv2(lrelu(conv1(x)))   (shared by both kernels).

    x_ref : (Cin, tm) f32     w1_ref: (C1, Cin) cdt    b1_ref: (C1, 1) cdt
    w2_ref: (C2p, C1) bf16    returns (C2p, tm) f32
    """
    cin = x_ref.shape[0]
    x = x_ref[...].astype(compute_dtype)
    w1 = w1_ref[...]
    # K == input_nc is tiny: unrolled broadcast-FMA on the VPU instead of MXU.
    acc = w1[:, 0:1] * x[0:1, :]
    for j in range(1, cin):
        acc = acc + w1[:, j:j + 1] * x[j:j + 1, :]
    y1 = _leaky_relu(acc + b1_ref[...])                       # (C1, tm) cdt
    # conv2 on the MXU: (C2p, C1) x (C1, tm), f32 accumulation.
    return jnp.dot(w2_ref[...], y1.astype(w2_ref.dtype),
                   preferred_element_type=jnp.float32)


def _stats_kernel(x_ref, w1_ref, b1_ref, w2_ref, stats_ref, *,
                  m_total, tm, compute_dtype):
    """Per-tile partial BatchNorm statistics of y2: (sum, sum of squares)."""
    y2 = _conv1_conv2(x_ref, w1_ref, b1_ref, w2_ref, compute_dtype)

    def _write(y):
        stats_ref[:, 0:1] = jnp.sum(y, axis=1, keepdims=True)
        stats_ref[:, 1:2] = jnp.sum(y * y, axis=1, keepdims=True)

    if m_total % tm == 0:
        # No ragged tail: no masking anywhere (static).
        _write(y2)
    else:
        i = pl.program_id(1)
        last = pl.num_programs(1) - 1

        @pl.when(i != last)
        def _():
            _write(y2)

        @pl.when(i == last)
        def _():
            col = jax.lax.broadcasted_iota(jnp.int32, (1, tm), 1) + i * tm
            _write(jnp.where(col < m_total, y2, 0.0))


def _disc_kernel(x_ref, w1_ref, b1_ref, w2_ref, scale_ref, shift_ref, w3_ref,
                 o_ref, *, compute_dtype):
    """conv1 -> lrelu -> conv2 -> BN (fused scale/shift) -> lrelu -> conv3."""
    y2 = _conv1_conv2(x_ref, w1_ref, b1_ref, w2_ref, compute_dtype)  # f32
    y2 = _leaky_relu(y2 * scale_ref[...] + shift_ref[...])           # f32
    y3 = jnp.dot(w3_ref[...], y2.astype(w3_ref.dtype),               # (8, tm)
                 preferred_element_type=jnp.float32)
    o_ref[...] = y3[0:1, :].astype(o_ref.dtype)                      # (1, tm)


# ---------------------------------------------------------------------------
# Wrapper
# ---------------------------------------------------------------------------

def _pick_tm(m, tm_max):
    """Tile size along the per-image pixel axis (m = H*W)."""
    if m <= tm_max:
        # Single tile per image; split in two when comfortably large so a
        # second TensorCore (v7x) gets work even at batch == 1.
        if m >= 4096 and m % 256 == 0:
            return m // 2
        return m
    n = pl.cdiv(m, tm_max)
    if n % 2:
        n += 1                       # even tile count shards nicely on v7x
    return max(128, _round_up(pl.cdiv(m, n), 128))


def pixel_discriminator_forward(params, x_nchw, *, tm_max=8192):
    """PixelDiscriminator forward: (B, Cin, H, W) -> (B, 1, H, W)."""
    B, cin, H, W = x_nchw.shape
    HW = H * W
    M = B * HW

    w1, b1, w2, w3 = params["w1"], params["b1"], params["w2"], params["w3"]
    gamma, beta = params["gamma"], params["beta"]
    c1, c2p, c3p = w1.shape[0], w2.shape[0], w3.shape[0]

    cdt = _conv1_compute_dtype()
    w1c = w1.astype(cdt)
    b1c = b1.astype(cdt)

    # Consume x directly from its native layout (free reshape, no copy).
    x3 = x_nchw.reshape(B, cin, HW)

    tm = _pick_tm(HW, tm_max)
    n_m = pl.cdiv(HW, tm)
    grid = (B, n_m)
    cparams = pltpu.CompilerParams(
        dimension_semantics=("parallel", "parallel"),
        vmem_limit_bytes=VMEM_LIMIT)

    fixed = lambda b, i: (0, 0)
    x_spec = pl.BlockSpec((None, cin, tm), lambda b, i: (b, 0, i))
    w1_spec = pl.BlockSpec((c1, cin), fixed)
    b1_spec = pl.BlockSpec((c1, 1), fixed)
    w2_spec = pl.BlockSpec((c2p, c1), fixed)

    flops12 = 2 * M * (c1 * cin + c2p * c1)
    bytes_x = M * cin * 4
    bytes_w = w1.size * 4 + b1.size * 4 + w2.size * 2

    # ---- pass 1: global BatchNorm statistics (per-tile partials, parallel grid)
    partial = pl.pallas_call(
        functools.partial(_stats_kernel, m_total=HW, tm=tm, compute_dtype=cdt),
        out_shape=jax.ShapeDtypeStruct((B * n_m * c2p, 2), jnp.float32),
        grid=grid,
        in_specs=[x_spec, w1_spec, b1_spec, w2_spec],
        out_specs=pl.BlockSpec((c2p, 2), lambda b, i: (b * n_m + i, 0)),
        compiler_params=cparams,
        cost_estimate=pl.CostEstimate(
            flops=flops12, transcendentals=0,
            bytes_accessed=bytes_x + bytes_w + B * n_m * c2p * 2 * 4),
    )(x3, w1c, b1c, w2)

    stats = jnp.sum(partial.reshape(B * n_m, c2p, 2), axis=0)      # tiny reduce
    mean = stats[:, 0] / M
    var = jnp.maximum(stats[:, 1] / M - mean * mean, 0.0)          # biased var
    inv = jax.lax.rsqrt(var + BN_EPS)
    scale = (gamma * inv).reshape(c2p, 1).astype(jnp.float32)
    shift = (beta - mean * gamma * inv).reshape(c2p, 1).astype(jnp.float32)

    # ---- pass 2: recompute y2 (cheaper than a y2 HBM round trip), BN, conv3
    out = pl.pallas_call(
        functools.partial(_disc_kernel, compute_dtype=cdt),
        out_shape=jax.ShapeDtypeStruct((B, 1, HW), jnp.float32),
        grid=grid,
        in_specs=[x_spec, w1_spec, b1_spec, w2_spec,
                  pl.BlockSpec((c2p, 1), fixed),
                  pl.BlockSpec((c2p, 1), fixed),
                  pl.BlockSpec((c3p, c2p), fixed)],
        out_specs=pl.BlockSpec((None, 1, tm), lambda b, i: (b, 0, i)),
        compiler_params=cparams,
        cost_estimate=pl.CostEstimate(
            flops=flops12 + 2 * M * c3p * c2p, transcendentals=0,
            bytes_accessed=bytes_x + bytes_w + w3.size * 2 + M * 4),
    )(x3, w1c, b1c, w2, scale, shift, w3)

    return out.reshape(B, 1, H, W)


# ---------------------------------------------------------------------------
# Parameters (PyTorch-default-style init)
# ---------------------------------------------------------------------------

def init_pixel_discriminator(key, input_nc, ndf=64):
    c1, c2, c3 = ndf, 2 * ndf, 1
    c2p = _round_up(c2, 128)             # conv2 output channels, lane padded
    c3p = 8                              # sublane aligned; only row 0 is real
    k1, k1b, k2, k3 = jax.random.split(key, 4)

    def u(k, shape, fan_in):
        bound = 1.0 / math.sqrt(fan_in)
        return jax.random.uniform(k, shape, jnp.float32, -bound, bound)

    w1 = u(k1, (c1, input_nc), input_nc)                          # (ndf, Cin)
    b1 = u(k1b, (c1, 1), input_nc)                                # (ndf, 1)
    w2 = jnp.zeros((c2p, c1), jnp.float32).at[:c2, :].set(u(k2, (c2, c1), c1))
    w3 = jnp.zeros((c3p, c2p), jnp.float32).at[:c3, :c2].set(u(k3, (c3, c2), c2))
    gamma = jnp.zeros((c2p,), jnp.float32).at[:c2].set(1.0)       # BN weight
    beta = jnp.zeros((c2p,), jnp.float32)                         # BN bias
    return {
        "w1": w1,                           # f32 master; cast to compute dtype
        "b1": b1,                           # f32 master
        "w2": w2.astype(jnp.bfloat16),      # bf16 MXU operand
        "gamma": gamma,
        "beta": beta,
        "w3": w3.astype(jnp.bfloat16),      # bf16 MXU operand
    }


# ---------------------------------------------------------------------------
# Pure-JAX reference (for tolerance check)
# ---------------------------------------------------------------------------

def _reference_forward(params, x):
    w1 = params["w1"].astype(jnp.float32)
    b1 = params["b1"].astype(jnp.float32)
    w2 = params["w2"].astype(jnp.float32)
    w3 = params["w3"].astype(jnp.float32)
    gamma, beta = params["gamma"], params["beta"]
    B, cin, H, W = x.shape
    xm = x.reshape(B, cin, H * W).astype(jnp.float32)
    y1 = jnp.einsum("oc,bcm->bom", w1, xm) + b1.reshape(1, -1, 1)
    y1 = jnp.maximum(y1, LRELU_SLOPE * y1)
    y2 = jnp.einsum("oc,bcm->bom", w2, y1)
    mean = y2.mean(axis=(0, 2)).reshape(1, -1, 1)
    var = ((y2 - mean) ** 2).mean(axis=(0, 2)).reshape(1, -1, 1)
    y2n = (y2 - mean) * jax.lax.rsqrt(var + BN_EPS)
    y2n = gamma.reshape(1, -1, 1) * y2n + beta.reshape(1, -1, 1)
    y2n = jnp.maximum(y2n, LRELU_SLOPE * y2n)
    y3 = jnp.einsum("oc,bcm->bom", w3, y2n)
    return y3[:, 0:1, :].reshape(B, 1, H, W)


if __name__ == "__main__":
    key = jax.random.PRNGKey(0)
    pkey, xkey, xkey2 = jax.random.split(key, 3)

    input_nc, ndf = 3, 64                  # module defaults, small spatial size
    params = init_pixel_discriminator(pkey, input_nc, ndf)

    fwd = jax.jit(pixel_discriminator_forward, static_argnames=("tm_max",))

    # Main small test (single full-image tile per batch element).
    B, H, W = 2, 16, 16
    x = jax.random.normal(xkey, (B, input_nc, H, W), jnp.float32)
    out = jax.block_until_ready(fwd(params, x))
    assert out.shape == (B, 1, H, W), out.shape
    assert bool(jnp.all(jnp.isfinite(out)))
    ref = _reference_forward(params, x)
    err = float(jnp.max(jnp.abs(out - ref)))
    assert err < 0.25, f"max abs err {err}"

    # Ragged-M test: forces a partial tail tile (masked stats + partial writes).
    x2 = jax.random.normal(xkey2, (1, input_nc, 9, 15), jnp.float32)  # HW=135
    out2 = jax.block_until_ready(fwd(params, x2, tm_max=128))
    assert out2.shape == (1, 1, 9, 15), out2.shape
    assert bool(jnp.all(jnp.isfinite(out2)))
    ref2 = _reference_forward(params, x2)
    err2 = float(jnp.max(jnp.abs(out2 - ref2)))
    assert err2 < 0.25, f"max abs err (ragged) {err2}"

    print("KERNEL_OK")
</pallas_src>

<mosaic_0001>
module attributes {stable_mosaic.version = 11 : i64} {
  func.func @_stats_kernel(%arg0: i32, %arg1: i32, %arg2: memref<1x3x256xf32, #tpu.memory_space<vmem>>, %arg3: memref<64x3xf32, #tpu.memory_space<vmem>>, %arg4: memref<64x1xf32, #tpu.memory_space<vmem>>, %arg5: memref<128x64xbf16, #tpu.memory_space<vmem>>, %arg6: memref<128x2xf32, #tpu.memory_space<vmem>>) attributes {dimension_semantics = [#tpu.dimension_semantics<parallel>, #tpu.dimension_semantics<parallel>], iteration_bounds = array<i64: 2, 1>, scalar_prefetch = 0 : i64, scratch_operands = 0 : i64, tpu.core_type = #tpu.core_type<tc>, window_params = [{transform_indices = @transform_0, window_bounds = array<i64: 1, 3, 256>}, {pipeline_mode = #tpu.pipeline_mode<synchronous>, transform_indices = @transform_1, window_bounds = array<i64: 64, 3>}, {pipeline_mode = #tpu.pipeline_mode<synchronous>, transform_indices = @transform_2, window_bounds = array<i64: 64, 1>}, {pipeline_mode = #tpu.pipeline_mode<synchronous>, transform_indices = @transform_3, window_bounds = array<i64: 128, 64>}, {transform_indices = @transform_4, window_bounds = array<i64: 128, 2>}]} {
    %c0 = arith.constant 0 : index
    %c0_0 = arith.constant 0 : index
    %c0_1 = arith.constant 0 : index
    %0 = vector.load %arg2[%c0, %c0_0, %c0_1] : memref<1x3x256xf32, #tpu.memory_space<vmem>>, vector<1x3x256xf32>
    %1 = vector.shape_cast %0 : vector<1x3x256xf32> to vector<3x256xf32>
    %c0_2 = arith.constant 0 : index
    %c0_3 = arith.constant 0 : index
    %2 = vector.load %arg3[%c0_2, %c0_3] : memref<64x3xf32, #tpu.memory_space<vmem>>, vector<64x3xf32>
    %3 = vector.extract_strided_slice %2 {offsets = [0, 0], sizes = [64, 1], strides = [1, 1]} : vector<64x3xf32> to vector<64x1xf32>
    %4 = vector.extract_strided_slice %1 {offsets = [0, 0], sizes = [1, 256], strides = [1, 1]} : vector<3x256xf32> to vector<1x256xf32>
    %5 = vector.broadcast %3 : vector<64x1xf32> to vector<64x256xf32>
    %6 = vector.broadcast %4 : vector<1x256xf32> to vector<64x256xf32>
    %7 = arith.mulf %5, %6 : vector<64x256xf32>
    %8 = vector.extract_strided_slice %2 {offsets = [0, 1], sizes = [64, 1], strides = [1, 1]} : vector<64x3xf32> to vector<64x1xf32>
    %9 = vector.extract_strided_slice %1 {offsets = [1, 0], sizes = [1, 256], strides = [1, 1]} : vector<3x256xf32> to vector<1x256xf32>
    %10 = vector.broadcast %8 : vector<64x1xf32> to vector<64x256xf32>
    %11 = vector.broadcast %9 : vector<1x256xf32> to vector<64x256xf32>
    %12 = arith.mulf %10, %11 : vector<64x256xf32>
    %13 = arith.addf %7, %12 : vector<64x256xf32>
    %14 = vector.extract_strided_slice %2 {offsets = [0, 2], sizes = [64, 1], strides = [1, 1]} : vector<64x3xf32> to vector<64x1xf32>
    %15 = vector.extract_strided_slice %1 {offsets = [2, 0], sizes = [1, 256], strides = [1, 1]} : vector<3x256xf32> to vector<1x256xf32>
    %16 = vector.broadcast %14 : vector<64x1xf32> to vector<64x256xf32>
    %17 = vector.broadcast %15 : vector<1x256xf32> to vector<64x256xf32>
    %18 = arith.mulf %16, %17 : vector<64x256xf32>
    %19 = arith.addf %13, %18 : vector<64x256xf32>
    %c0_4 = arith.constant 0 : index
    %c0_5 = arith.constant 0 : index
    %20 = vector.load %arg4[%c0_4, %c0_5] : memref<64x1xf32, #tpu.memory_space<vmem>>, vector<64x1xf32>
    %21 = vector.broadcast %20 : vector<64x1xf32> to vector<64x256xf32>
    %22 = arith.addf %19, %21 : vector<64x256xf32>
    %cst = arith.constant 2.000000e-01 : f32
    %23 = vector.broadcast %cst : f32 to vector<64x256xf32>
    %24 = arith.mulf %23, %22 : vector<64x256xf32>
    %25 = arith.maximumf %22, %24 : vector<64x256xf32>
    %c0_6 = arith.constant 0 : index
    %c0_7 = arith.constant 0 : index
    %26 = vector.load %arg5[%c0_6, %c0_7] : memref<128x64xbf16, #tpu.memory_space<vmem>>, vector<128x64xbf16>
    %27 = arith.truncf %25 : vector<64x256xf32> to vector<64x256xbf16>
    %cst_8 = arith.constant dense<0.000000e+00> : vector<128x256xf32>
    %28 = tpu.matmul %26, %27, %cst_8 {dimension_numbers = #tpu.dot_dimension_numbers<[1], [0], [0], [1], [0, 0, 1, 1], [], []>} : vector<128x64xbf16>, vector<64x256xbf16>, vector<128x256xf32> -> vector<128x256xf32>
    %cst_9 = arith.constant dense<0.000000e+00> : vector<128xf32>
    %29 = vector.multi_reduction <add>, %28, %cst_9 [1] : vector<128x256xf32> to vector<128xf32>
    %30 = vector.shape_cast %29 : vector<128xf32> to vector<128x1xf32>
    %c0_10 = arith.constant 0 : index
    %c0_11 = arith.constant 0 : index
    %31 = vector.load %arg6[%c0_10, %c0_11] : memref<128x2xf32, #tpu.memory_space<vmem>>, vector<128x1xf32>
    tpu.vector_store %arg6[%c0_10, %c0_11], %30 {strides = array<i32>} : memref<128x2xf32, #tpu.memory_space<vmem>>, vector<128x1xf32>,
    %32 = arith.mulf %28, %28 : vector<128x256xf32>
    %cst_12 = arith.constant dense<0.000000e+00> : vector<128xf32>
    %33 = vector.multi_reduction <add>, %32, %cst_12 [1] : vector<128x256xf32> to vector<128xf32>
    %34 = vector.shape_cast %33 : vector<128xf32> to vector<128x1xf32>
    %c0_13 = arith.constant 0 : index
    %c1 = arith.constant 1 : index
    %35 = vector.load %arg6[%c0_13, %c1] : memref<128x2xf32, #tpu.memory_space<vmem>>, vector<128x1xf32>
    tpu.vector_store %arg6[%c0_13, %c1], %34 {strides = array<i32>} : memref<128x2xf32, #tpu.memory_space<vmem>>, vector<128x1xf32>,
    return
  }
  func.func @transform_0(%arg0: i32, %arg1: i32) -> (i32, i32, i32) {
    %c0_i32 = arith.constant 0 : i32
    %c0_i32_0 = arith.constant 0 : i32
    return %arg0, %c0_i32, %arg1 : i32, i32, i32
  }
  func.func @transform_1(%arg0: i32, %arg1: i32) -> (i32, i32) {
    %c0_i32 = arith.constant 0 : i32
    %c0_i32_0 = arith.constant 0 : i32
    %c0_i32_1 = arith.constant 0 : i32
    return %c0_i32, %c0_i32_0 : i32, i32
  }
  func.func @transform_2(%arg0: i32, %arg1: i32) -> (i32, i32) {
    %c0_i32 = arith.constant 0 : i32
    %c0_i32_0 = arith.constant 0 : i32
    %c0_i32_1 = arith.constant 0 : i32
    return %c0_i32, %c0_i32_0 : i32, i32
  }
  func.func @transform_3(%arg0: i32, %arg1: i32) -> (i32, i32) {
    %c0_i32 = arith.constant 0 : i32
    %c0_i32_0 = arith.constant 0 : i32
    %c0_i32_1 = arith.constant 0 : i32
    return %c0_i32, %c0_i32_0 : i32, i32
  }
  func.func @transform_4(%arg0: i32, %arg1: i32) -> (i32, i32) {
    %c1_i32 = arith.constant 1 : i32
    %0 = arith.muli %arg0, %c1_i32 : i32
    %1 = arith.addi %0, %arg1 : i32
    %c0_i32 = arith.constant 0 : i32
    %c0_i32_0 = arith.constant 0 : i32
    return %1, %c0_i32 : i32, i32
  }
}

module attributes {stable_mosaic.version = 11 : i64} {
  func.func @_disc_kernel(%arg0: i32, %arg1: i32, %arg2: memref<1x3x256xf32, #tpu.memory_space<vmem>>, %arg3: memref<64x3xf32, #tpu.memory_space<vmem>>, %arg4: memref<64x1xf32, #tpu.memory_space<vmem>>, %arg5: memref<128x64xbf16, #tpu.memory_space<vmem>>, %arg6: memref<128x1xf32, #tpu.memory_space<vmem>>, %arg7: memref<128x1xf32, #tpu.memory_space<vmem>>, %arg8: memref<8x128xbf16, #tpu.memory_space<vmem>>, %arg9: memref<1x1x256xf32, #tpu.memory_space<vmem>>) attributes {dimension_semantics = [#tpu.dimension_semantics<parallel>, #tpu.dimension_semantics<parallel>], iteration_bounds = array<i64: 2, 1>, scalar_prefetch = 0 : i64, scratch_operands = 0 : i64, tpu.core_type = #tpu.core_type<tc>, window_params = [{transform_indices = @transform_0, window_bounds = array<i64: 1, 3, 256>}, {pipeline_mode = #tpu.pipeline_mode<synchronous>, transform_indices = @transform_1, window_bounds = array<i64: 64, 3>}, {pipeline_mode = #tpu.pipeline_mode<synchronous>, transform_indices = @transform_2, window_bounds = array<i64: 64, 1>}, {pipeline_mode = #tpu.pipeline_mode<synchronous>, transform_indices = @transform_3, window_bounds = array<i64: 128, 64>}, {pipeline_mode = #tpu.pipeline_mode<synchronous>, transform_indices = @transform_4, window_bounds = array<i64: 128, 1>}, {pipeline_mode = #tpu.pipeline_mode<synchronous>, transform_indices = @transform_5, window_bounds = array<i64: 128, 1>}, {pipeline_mode = #tpu.pipeline_mode<synchronous>, transform_indices = @transform_6, window_bounds = array<i64: 8, 128>}, {transform_indices = @transform_7, window_bounds = array<i64: 1, 1, 256>}]} {
    %c0 = arith.constant 0 : index
    %c0_0 = arith.constant 0 : index
    %c0_1 = arith.constant 0 : index
    %0 = vector.load %arg2[%c0, %c0_0, %c0_1] : memref<1x3x256xf32, #tpu.memory_space<vmem>>, vector<1x3x256xf32>
    %1 = vector.shape_cast %0 : vector<1x3x256xf32> to vector<3x256xf32>
    %c0_2 = arith.constant 0 : index
    %c0_3 = arith.constant 0 : index
    %2 = vector.load %arg3[%c0_2, %c0_3] : memref<64x3xf32, #tpu.memory_space<vmem>>, vector<64x3xf32>
    %3 = vector.extract_strided_slice %2 {offsets = [0, 0], sizes = [64, 1], strides = [1, 1]} : vector<64x3xf32> to vector<64x1xf32>
    %4 = vector.extract_strided_slice %1 {offsets = [0, 0], sizes = [1, 256], strides = [1, 1]} : vector<3x256xf32> to vector<1x256xf32>
    %5 = vector.broadcast %3 : vector<64x1xf32> to vector<64x256xf32>
    %6 = vector.broadcast %4 : vector<1x256xf32> to vector<64x256xf32>
    %7 = arith.mulf %5, %6 : vector<64x256xf32>
    %8 = vector.extract_strided_slice %2 {offsets = [0, 1], sizes = [64, 1], strides = [1, 1]} : vector<64x3xf32> to vector<64x1xf32>
    %9 = vector.extract_strided_slice %1 {offsets = [1, 0], sizes = [1, 256], strides = [1, 1]} : vector<3x256xf32> to vector<1x256xf32>
    %10 = vector.broadcast %8 : vector<64x1xf32> to vector<64x256xf32>
    %11 = vector.broadcast %9 : vector<1x256xf32> to vector<64x256xf32>
    %12 = arith.mulf %10, %11 : vector<64x256xf32>
    %13 = arith.addf %7, %12 : vector<64x256xf32>
    %14 = vector.extract_strided_slice %2 {offsets = [0, 2], sizes = [64, 1], strides = [1, 1]} : vector<64x3xf32> to vector<64x1xf32>
    %15 = vector.extract_strided_slice %1 {offsets = [2, 0], sizes = [1, 256], strides = [1, 1]} : vector<3x256xf32> to vector<1x256xf32>
    %16 = vector.broadcast %14 : vector<64x1xf32> to vector<64x256xf32>
    %17 = vector.broadcast %15 : vector<1x256xf32> to vector<64x256xf32>
    %18 = arith.mulf %16, %17 : vector<64x256xf32>
    %19 = arith.addf %13, %18 : vector<64x256xf32>
    %c0_4 = arith.constant 0 : index
    %c0_5 = arith.constant 0 : index
    %20 = vector.load %arg4[%c0_4, %c0_5] : memref<64x1xf32, #tpu.memory_space<vmem>>, vector<64x1xf32>
    %21 = vector.broadcast %20 : vector<64x1xf32> to vector<64x256xf32>
    %22 = arith.addf %19, %21 : vector<64x256xf32>
    %cst = arith.constant 2.000000e-01 : f32
    %23 = vector.broadcast %cst : f32 to vector<64x256xf32>
    %24 = arith.mulf %23, %22 : vector<64x256xf32>
    %25 = arith.maximumf %22, %24 : vector<64x256xf32>
    %c0_6 = arith.constant 0 : index
    %c0_7 = arith.constant 0 : index
    %26 = vector.load %arg5[%c0_6, %c0_7] : memref<128x64xbf16, #tpu.memory_space<vmem>>, vector<128x64xbf16>
    %27 = arith.truncf %25 : vector<64x256xf32> to vector<64x256xbf16>
    %cst_8 = arith.constant dense<0.000000e+00> : vector<128x256xf32>
    %28 = tpu.matmul %26, %27, %cst_8 {dimension_numbers = #tpu.dot_dimension_numbers<[1], [0], [0], [1], [0, 0, 1, 1], [], []>} : vector<128x64xbf16>, vector<64x256xbf16>, vector<128x256xf32> -> vector<128x256xf32>
    %c0_9 = arith.constant 0 : index
    %c0_10 = arith.constant 0 : index
    %29 = vector.load %arg6[%c0_9, %c0_10] : memref<128x1xf32, #tpu.memory_space<vmem>>, vector<128x1xf32>
    %30 = vector.broadcast %29 : vector<128x1xf32> to vector<128x256xf32>
    %31 = arith.mulf %28, %30 : vector<128x256xf32>
    %c0_11 = arith.constant 0 : index
    %c0_12 = arith.constant 0 : index
    %32 = vector.load %arg7[%c0_11, %c0_12] : memref<128x1xf32, #tpu.memory_space<vmem>>, vector<128x1xf32>
    %33 = vector.broadcast %32 : vector<128x1xf32> to vector<128x256xf32>
    %34 = arith.addf %31, %33 : vector<128x256xf32>
    %cst_13 = arith.constant 2.000000e-01 : f32
    %35 = vector.broadcast %cst_13 : f32 to vector<128x256xf32>
    %36 = arith.mulf %35, %34 : vector<128x256xf32>
    %37 = arith.maximumf %34, %36 : vector<128x256xf32>
    %c0_14 = arith.constant 0 : index
    %c0_15 = arith.constant 0 : index
    %38 = vector.load %arg8[%c0_14, %c0_15] : memref<8x128xbf16, #tpu.memory_space<vmem>>, vector<8x128xbf16>
    %39 = arith.truncf %37 : vector<128x256xf32> to vector<128x256xbf16>
    %cst_16 = arith.constant dense<0.000000e+00> : vector<8x256xf32>
    %40 = tpu.matmul %38, %39, %cst_16 {dimension_numbers = #tpu.dot_dimension_numbers<[1], [0], [0], [1], [0, 0, 1, 1], [], []>} : vector<8x128xbf16>, vector<128x256xbf16>, vector<8x256xf32> -> vector<8x256xf32>
    %41 = vector.extract_strided_slice %40 {offsets = [0, 0], sizes = [1, 256], strides = [1, 1]} : vector<8x256xf32> to vector<1x256xf32>
    %c0_17 = arith.constant 0 : index
    %c0_18 = arith.constant 0 : index
    %c0_19 = arith.constant 0 : index
    %42 = vector.load %arg9[%c0_17, %c0_18, %c0_19] : memref<1x1x256xf32, #tpu.memory_space<vmem>>, vector<1x1x256xf32>
    %43 = vector.shape_cast %42 : vector<1x1x256xf32> to vector<1x256xf32>
    %44 = vector.shape_cast %41 : vector<1x256xf32> to vector<1x1x256xf32>
    tpu.vector_store %arg9[%c0_17, %c0_18, %c0_19], %44 {strides = array<i32>} : memref<1x1x256xf32, #tpu.memory_space<vmem>>, vector<1x1x256xf32>,
    return
  }
  func.func @transform_0(%arg0: i32, %arg1: i32) -> (i32, i32, i32) {
    %c0_i32 = arith.constant 0 : i32
    %c0_i32_0 = arith.constant 0 : i32
    return %arg0, %c0_i32, %arg1 : i32, i32, i32
  }
  func.func @transform_1(%arg0: i32, %arg1: i32) -> (i32, i32) {
    %c0_i32 = arith.constant 0 : i32
    %c0_i32_0 = arith.constant 0 : i32
    %c0_i32_1 = arith.constant 0 : i32
    return %c0_i32, %c0_i32_0 : i32, i32
  }
  func.func @transform_2(%arg0: i32, %arg1: i32) -> (i32, i32) {
    %c0_i32 = arith.constant 0 : i32
    %c0_i32_0 = arith.constant 0 : i32
    %c0_i32_1 = arith.constant 0 : i32
    return %c0_i32, %c0_i32_0 : i32, i32
  }
  func.func @transform_3(%arg0: i32, %arg1: i32) -> (i32, i32) {
    %c0_i32 = arith.constant 0 : i32
    %c0_i32_0 = arith.constant 0 : i32
    %c0_i32_1 = arith.constant 0 : i32
    return %c0_i32, %c0_i32_0 : i32, i32
  }
  func.func @transform_4(%arg0: i32, %arg1: i32) -> (i32, i32) {
    %c0_i32 = arith.constant 0 : i32
    %c0_i32_0 = arith.constant 0 : i32
    %c0_i32_1 = arith.constant 0 : i32
    return %c0_i32, %c0_i32_0 : i32, i32
  }
  func.func @transform_5(%arg0: i32, %arg1: i32) -> (i32, i32) {
    %c0_i32 = arith.constant 0 : i32
    %c0_i32_0 = arith.constant 0 : i32
    %c0_i32_1 = arith.constant 0 : i32
    return %c0_i32, %c0_i32_0 : i32, i32
  }
  func.func @transform_6(%arg0: i32, %arg1: i32) -> (i32, i32) {
    %c0_i32 = arith.constant 0 : i32
    %c0_i32_0 = arith.constant 0 : i32
    %c0_i32_1 = arith.constant 0 : i32
    return %c0_i32, %c0_i32_0 : i32, i32
  }
  func.func @transform_7(%arg0: i32, %arg1: i32) -> (i32, i32, i32) {
    %c0_i32 = arith.constant 0 : i32
    %c0_i32_0 = arith.constant 0 : i32
    return %arg0, %c0_i32, %arg1 : i32, i32, i32
  }
}

</mosaic_0001>

<bundles_post_ra>
// kernel: pixel_discriminator_forward.2
= control target key start
LH: loop header
LB: loop body
LE: loop exit
PB: predicated region body
PF: predicated region fallthrough
CT: control target
= control target key end

     0   :  { %s1153_s15 = smov 0   ;;  %s1155_s16 = smov 0   ;;  %s1434_s0 = inlined_call_operand.vmem [shape: f32[2,3,256], index: 0, kind: input, shape index: {}]   ;;  %s1435_s1 = inlined_call_operand.vmem [shape: f32[64,3], index: 1, kind: input, shape index: {}]   ;;  %s1436_s2 = inlined_call_operand.vmem [shape: f32[64,1], index: 2, kind: input, shape index: {}]   ;;  %s1437_s3 = inlined_call_operand.vmem [shape: bf16[128,64], index: 3, kind: input, shape index: {}]   ;;  %s1438_s4 = inlined_call_operand.vmem [shape: f32[256,2], index: 4, kind: output, shape index: {}]  }
   0x1   :  { %s1157_s17 = smov 0  }
   0x2 LB: > { %s26_s18 = sadd.s32 1, %s1119_s16  ;;  %p1019_p0 = scmp.ge.s32.totalorder %s1123_s17, 1  ;;  %s1123_s17 = sphi %s1157_s17, %s14_s17   ;;  %s1119_s16 = sphi %s1155_s16, %s1440_s16   ;;  %s1115_s15 = sphi %s1153_s15, %s1439_s15  }
   0x3   : > { %p28_p1 = scmp.ge.s32.totalorder %s26_s18, 2  ;;  %p183_p2 = scmp.lt.s32.totalorder %s1123_s17, 3 }
   0x5   : > { %s1442_s18 = smov (%p28_p1, %s26_s18), 0  ;;  %p184_p3 = pnand %p1019_p0, %p183_p2 }
   0x6   : > { %v234_v0 = vld [vmem:[%s1435_s1] sm:$0xff] (!%p184_p3)  ;;  %v1125_v1 = vmov (!%p184_p3), 2   ;;  %v1126_v2 = vmov (!%p184_p3), 1   ;;  %v236_v3 = vld [vmem:[%s1435_s1 + $0x10] sm:$0xff] (!%p184_p3)  ;;  %v235_v4 = vld [vmem:[%s1435_s1 + $0x8] sm:$0xff] (!%p184_p3)  ;;  %v1127_v5 = vmov (!%p184_p3), 0   ;;  %v283_v23 = vlaneseq (!%p184_p3) }
   0x7   : > { %187 = sbr.rel (%p184_p3) target bundleno = 653 (0x28d), region = 36  ;;  %1079 = vset.pattern.permute.xlu0 (!%p184_p3), %v1125_v1  ;;  %1078 = vset.pattern.permute.xlu1 (!%p184_p3), %v1126_v2  ;;  %v239_v6 = vld [vmem:[%s1435_s1 + $0x28] sm:$0xff] (!%p184_p3)  ;;  %v238_v7 = vld [vmem:[%s1435_s1 + $0x20] sm:$0xff] (!%p184_p3)  ;;  %v241_v8 = vld [vmem:[%s1435_s1 + $0x38] sm:$0xff] (!%p184_p3)  ;;  %p215_p4 = scmp.lt.s32.totalorder (!%p184_p3), %s1115_s15, 1  ;;  %vm641_vm0 = vcmask (!%p184_p3), 523264  }
   0x8   : > { %400 = vperm.xlu0 (!%p184_p3), %1079, %v234_v0   ;;  %318 = vperm.xlu1 (!%p184_p3), %1078, %v234_v0   ;;  %v237_v9 = vld [vmem:[%s1435_s1 + $0x18] sm:$0xff] (!%p184_p3)  ;;  %v481_v10 = vld [vmem:[%s1436_s2] sm:$0xff] (!%p184_p3)  ;;  %v482_v11 = vld [vmem:[%s1436_s2 + $0x8] sm:$0xff] (!%p184_p3)  ;;  %v284_v26 = vshrl.u32 (!%p184_p3), %v283_v23, 7  ;;  %s1022_s28 = sshll.u32 (!%p184_p3), %s1115_s15, 4  ;;  %vm827_vm1 = vcmask (!%p184_p3), 7168  }
   0x9   : > { %698 = vmatprep.mubr.bf16.mxu0 (!%p184_p3), %v1127_v5  ;;  %738 = vmatprep.mubr.bf16.mxu1 (!%p184_p3), %v1127_v5  ;;  %v240_v12 = vld [vmem:[%s1435_s1 + $0x30] sm:$0xff] (!%p184_p3)  ;;  %v485_v13 = vld [vmem:[%s1436_s2 + $0x20] sm:$0xff] (!%p184_p3)  ;;  %v488_v14 = vld [vmem:[%s1436_s2 + $0x38] sm:$0xff] (!%p184_p3)  ;;  %p226_p5 = scmp.lt.s32.totalorder (!%p184_p3), %s1022_s28, 31  ;;  %vm924_vm2 = vcmask (!%p184_p3), 15368  }
   0xa   : > { %v483_v15 = vld [vmem:[%s1436_s2 + $0x10] sm:$0xff] (!%p184_p3)  ;;  %v484_v16 = vld [vmem:[%s1436_s2 + $0x18] sm:$0xff] (!%p184_p3)  ;;  %v486_v17 = vld [vmem:[%s1436_s2 + $0x28] sm:$0xff] (!%p184_p3)  ;;  %v351_v28 = vsub.s32 (!%p184_p3), 1, %v284_v26  ;;  %v355_v29 = vsub.s32 (!%p184_p3), 5, %v284_v26  ;;  %v285_v30 = vsub.s32 (!%p184_p3), 0, %v284_v26 }
   0xb   : > { %v487_v18 = vld [vmem:[%s1436_s2 + $0x30] sm:$0xff] (!%p184_p3)  ;;  %v289_v31 = vsub.s32 (!%p184_p3), 4, %v284_v26  ;;  %v433_v34 = vsub.s32 (!%p184_p3), 2, %v284_v26  ;;  %v437_v35 = vsub.s32 (!%p184_p3), 6, %v284_v26 }
   0xc   : > { %408 = vperm.xlu0 (!%p184_p3), %1079, %v236_v3   ;;  %322 = vperm.xlu1 (!%p184_p3), %1078, %v235_v4  }
   0xe   : > { %s216_s29 = scalar_select %p215_p4, %s1115_s15, 1 }
   0xf   : > { %s1444_s28 = smov (!%p226_p5, %s1022_s28), 31 }
  0x10   : > { %420 = vperm.xlu0 %1079, %v239_v6   ;;  %1080 = vset.pattern.permute.xlu1 %v1125_v1  ;;  %s1042_s30 = sshll.u32 %s216_s29, 3  ;;  %s1023_s29 = sshll.u32 %s1444_s28, 3 }
  0x11   : > { %404 = vperm.xlu1 %1080, %v235_v4   ;;  %s222_s7 = scalar_lea.vmem %s1434_s0, %s1042_s30  ;;  %s1359_s6 = scalar_lea.vmem %s1438_s4, %s1023_s29 }
  0x12   : > { %v233_v33 = vld [vmem:[%s222_s7] sm:$0x77] }
  0x13   : > { %v352_v37 = vrot.slane %v233_v33, %v351_v28  ;;  %v356_v38 = vrot.slane %v233_v33, %v355_v29  ;;  %v286_v39 = vrot.slane %v233_v33, %v285_v30  ;;  %v290_v40 = vrot.slane %v233_v33, %v289_v31 }
  0x14   : > { %1087 = vset.pattern.permute.xlu0 %v1126_v2  ;;  %v434_v42 = vrot.slane %v233_v33, %v433_v34  ;;  %v438_v43 = vrot.slane %v233_v33, %v437_v35 }
  0x15   : > { %334 = vperm.xlu0 %1087, %v238_v7   ;;  %1081 = vset.pattern.permute.xlu1 %v1127_v5  ;;  %v1243_v44 = vrot.slane %v352_v37, %v351_v28  ;;  %v1245_v45 = vrot.slane %v356_v38, %v351_v28  ;;  %v1247_v46 = vrot.slane %v286_v39, %v285_v30 }
  0x16   : > { %254 = vperm.xlu1 %1081, %v236_v3   ;;  %v1249_v47 = vrot.slane %v290_v40, %v285_v30  ;;  %v1255_v54 = vrot.slane %v434_v42, %v433_v34  ;;  %v1257_v55 = vrot.slane %v438_v43, %v433_v34 }
  0x19   : > { %346 = vperm.xlu0 %1087, %v241_v8  }
  0x1a   : > { %1082 = vset.pattern.permute.xlu1 %v1126_v2 }
  0x1b   : > { %326 = vperm.xlu1 %1082, %v236_v3  }
  0x1d   : > { %1090 = vset.pattern.permute.xlu0 %v1127_v5 }
  0x1e   : > { %244 = vperm.xlu0 %1090, %v234_v0  }
  0x1f   : > { %330 = vperm.xlu1 %1082, %v237_v9  }
  0x22   : > { %249 = vperm.xlu0 %1090, %v235_v4  }
  0x23   : > { %1083 = vset.pattern.permute.xlu1 %v1125_v1 }
  0x24   : > { %412 = vperm.xlu1 %1083, %v237_v9  }
  0x26   : > { %259 = vperm.xlu0 %1090, %v237_v9  }
  0x28   : > { %1084 = vset.pattern.permute.xlu1 %v1127_v5 }
  0x29   : > { %491 = vperm.xlu1 %1084, %v481_v10  }
  0x2a   : > { %496 = vperm.xlu0 %1090, %v482_v11  }
  0x2d   : > { %264 = vperm.xlu1 %1084, %v238_v7  }
  0x2e   : > { %274 = vperm.xlu0 %1090, %v240_v12  }
  0x31   : > { %269 = vperm.xlu1 %1084, %v239_v6  }
  0x32   : > { %511 = vperm.xlu0 %1090, %v485_v13  }
  0x35   : > { %1085 = vset.pattern.permute.xlu1 %v1126_v2 }
  0x36   : > { %338 = vperm.xlu1 %1085, %v239_v6   ;;  %526 = vperm.xlu0 %1090, %v488_v14  }
  0x3a   : > { %1086 = vset.pattern.permute.xlu1 %v1125_v1 }
  0x3b   : > { %416 = vperm.xlu1 %1086, %v238_v7  }
  0x3f   : > { %1088 = vset.pattern.permute.xlu1 %v1127_v5 }
  0x40   : > { %501 = vperm.xlu1 %1088, %v483_v15  }
  0x44   : > { %506 = vperm.xlu1 %1088, %v484_v16  }
  0x48   : > { %279 = vperm.xlu1 %1088, %v241_v8  }
  0x4c   : > { %1089 = vset.pattern.permute.xlu1 %v1126_v2 }
  0x4d   : > { %342 = vperm.xlu1 %1089, %v240_v12  }
  0x51   : > { %1091 = vset.pattern.permute.xlu1 %v1125_v1 }
  0x52   : > { %424 = vperm.xlu1 %1091, %v240_v12  }
  0x56   : > { %428 = vperm.xlu1 %1091, %v241_v8  }
  0x5a   : > { %1092 = vset.pattern.permute.xlu1 %v1127_v5 }
  0x5b   : > { %516 = vperm.xlu1 %1092, %v486_v17  }
  0x5f   : > { %521 = vperm.xlu1 %1092, %v487_v18  }
  0x87   : > { %v319_v19 = vpop.permute.xlu1 %318  ;;  %v401_v20 = vpop.permute.xlu0 %400 }
  0x88   : > { %v367_v52 = vmul.f32 %v1243_v44, %v319_v19  ;;  %v368_v53 = vmul.f32 %v1245_v45, %v319_v19  ;;  %v449_v61 = vmul.f32 %v1255_v54, %v401_v20  ;;  %v450_v62 = vmul.f32 %v1257_v55, %v401_v20 }
  0x8b   : > { %v323_v21 = vpop.permute.xlu1 %322  ;;  %v1229_v22 = vpop.permute.xlu0 %408 }
  0x8c   : > { %v369_v57 = vmul.f32 %v1243_v44, %v323_v21  ;;  %v370_v58 = vmul.f32 %v1245_v45, %v323_v21  ;;  %v453_v40 = vmul.f32 %v1255_v54, %v1229_v22  ;;  %v454_v42 = vmul.f32 %v1257_v55, %v1229_v22 }
  0x8f   : > { %v1232_v24 = vpop.permute.xlu0 %420 }
  0x90   : > { %v405_v25 = vpop.permute.xlu1 %404 }
  0x91   : > { %v451_v6 = vmul.f32 %v1255_v54, %v405_v25  ;;  %v452_v7 = vmul.f32 %v1257_v55, %v405_v25 }
  0x94   : > { %v1237_v27 = vpop.permute.xlu0 %334 }
  0x95   : > { %v1239_v32 = vpop.permute.xlu1 %254 }
  0x96   : > { %v305_v38 = vmul.f32 %v1247_v46, %v1239_v32  ;;  %v306_v39 = vmul.f32 %v1249_v47, %v1239_v32 }
  0x98   : > { %v1241_v36 = vpop.permute.xlu0 %346 }
  0x9a   : > { %v327_v41 = vpop.permute.xlu1 %326 }
  0x9b   : > { %v371_v35 = vmul.f32 %v1243_v44, %v327_v41  ;;  %v372_v37 = vmul.f32 %v1245_v45, %v327_v41 }
  0x9d   : > { %v245_v48 = vpop.permute.xlu0 %244  ;;  %v387_v43 = vadd.f32 %v371_v35, %v305_v38 }
  0x9e   : > { %v331_v49 = vpop.permute.xlu1 %330  ;;  %v301_v50 = vmul.f32 %v1247_v46, %v245_v48  ;;  %v302_v51 = vmul.f32 %v1249_v47, %v245_v48  ;;  %v388_v48 = vadd.f32 %v372_v37, %v306_v39 }
  0x9f   : > { %v373_v41 = vmul.f32 %v1243_v44, %v331_v49  ;;  %v469_v32 = vadd.f32 %v453_v40, %v387_v43 }
  0xa0   : > { %v383_v63 = vadd.f32 %v367_v52, %v301_v50  ;;  %v384_v0 = vadd.f32 %v368_v53, %v302_v51  ;;  %v374_v53 = vmul.f32 %v1245_v45, %v331_v49 }
  0xa1   : > { %v250_v56 = vpop.permute.xlu0 %249 }
  0xa2   : > { %v303_v59 = vmul.f32 %v1247_v46, %v250_v56  ;;  %v304_v60 = vmul.f32 %v1249_v47, %v250_v56  ;;  %v465_v8 = vadd.f32 %v449_v61, %v383_v63  ;;  %v466_v9 = vadd.f32 %v450_v62, %v384_v0 }
  0xa3   : > { %v413_v1 = vpop.permute.xlu1 %412 }
  0xa4   : > { %v385_v2 = vadd.f32 %v369_v57, %v303_v59  ;;  %v386_v3 = vadd.f32 %v370_v58, %v304_v60  ;;  %v470_v58 = vadd.f32 %v454_v42, %v388_v48  ;;  %v455_v60 = vmul.f32 %v1255_v54, %v413_v1 }
  0xa5   : > { %v260_v4 = vpop.permute.xlu0 %259  ;;  %v456_v22 = vmul.f32 %v1257_v55, %v413_v1  ;;  %v375_v1 = vmul.f32 %v1243_v44, %v1237_v27  ;;  %v381_v42 = vmul.f32 %v1243_v44, %v1241_v36 }
  0xa6   : > { %v467_v11 = vadd.f32 %v451_v6, %v385_v2  ;;  %v468_v12 = vadd.f32 %v452_v7, %v386_v3  ;;  %v307_v50 = vmul.f32 %v1247_v46, %v260_v4  ;;  %v308_v51 = vmul.f32 %v1249_v47, %v260_v4 }
  0xa8   : > { %v492_v10 = vpop.permute.xlu1 %491  ;;  %v389_v56 = vadd.f32 %v373_v41, %v307_v50  ;;  %v390_v57 = vadd.f32 %v374_v53, %v308_v51 }
  0xa9   : > { %v529_v13 = vadd.f32 %v492_v10, %v465_v8  ;;  %v530_v14 = vadd.f32 %v492_v10, %v466_v9  ;;  %v497_v15 = vpop.permute.xlu0 %496 }
  0xaa   : > { %v531_v16 = vadd.f32 %v497_v15, %v467_v11  ;;  %v532_v17 = vadd.f32 %v497_v15, %v468_v12  ;;  %v471_v63 = vadd.f32 %v455_v60, %v389_v56  ;;  %v472_v0 = vadd.f32 %v456_v22, %v390_v57 }
  0xab   : > { %v545_v18 = vmul.f32 0.2, %v529_v13  ;;  %v546_v19 = vmul.f32 0.2, %v530_v14 }
  0xac   : > { %v547_v20 = vmul.f32 0.2, %v531_v16  ;;  %v548_v21 = vmul.f32 0.2, %v532_v17  ;;  %v265_v23 = vpop.permute.xlu1 %264 }
  0xad   : > { %v562_v26 = vmax.f32 %v530_v14, %v546_v19  ;;  %v561_v28 = vmax.f32 %v529_v13, %v545_v18  ;;  %v310_v18 = vmul.f32 %v1249_v47, %v265_v23  ;;  %v275_v19 = vpop.permute.xlu0 %274 }
  0xae   : > { %v564_v29 = vmax.f32 %v532_v17, %v548_v21  ;;  %v563_v30 = vmax.f32 %v531_v16, %v547_v20  ;;  %v376_v16 = vmul.f32 %v1245_v45, %v1237_v27  ;;  %v309_v17 = vmul.f32 %v1247_v46, %v265_v23 }
  0xaf   : > { %v314_v60 = vmul.f32 %v1249_v47, %v275_v19 }
  0xb0   : > { %v1267_v25 = vpop.permute.xlu1 %269  ;;  %v594_v31 = vpack.c.bf16 %v564_v29, %v562_v26  ;;  %v593_v33 = vpack.c.bf16 %v563_v30, %v561_v28  ;;  %v391_v28 = vadd.f32 %v375_v1, %v309_v17  ;;  %v392_v29 = vadd.f32 %v376_v16, %v310_v18 }
  0xb1   : > { %v512_v23 = vpop.permute.xlu0 %511  ;;  %v311_v39 = vmul.f32 %v1247_v46, %v1267_v25  ;;  %v312_v40 = vmul.f32 %v1249_v47, %v1267_v25  ;;  %v459_v25 = vmul.f32 %v1255_v54, %v1232_v24 }
  0xb2   : > { %666 = vmatprep.subr.bf16.mxu0 %v594_v31  ;;  %1043 = vmatprep.subr.bf16.mxu1 %v594_v31 }
  0xb3   : > { %667 = vmatpush1.bf16.msra.mxu0 %v593_v33  ;;  %1047 = vmatpush1.bf16.msra.mxu1 %v593_v33 }
  0xb5   : > { %v339_v34 = vpop.permute.xlu1 %338 }
  0xb6   : > { %v377_v30 = vmul.f32 %v1243_v44, %v339_v34  ;;  %v378_v27 = vmul.f32 %v1245_v45, %v339_v34  ;;  %v382_v34 = vmul.f32 %v1245_v45, %v1241_v36 }
  0xb8   : > { %v393_v43 = vadd.f32 %v377_v30, %v311_v39  ;;  %v394_v48 = vadd.f32 %v378_v27, %v312_v40  ;;  %v1098_v39 = vld [vmem:[%s1437_s3 + $0x30] sm:$0xff]   ;;  %v1099_v40 = vld [vmem:[%s1437_s3 + $0x18] sm:$0xff]  }
  0xba   : > { %v417_v52 = vpop.permute.xlu1 %416 }
  0xbb   : > { %v457_v21 = vmul.f32 %v1255_v54, %v417_v52  ;;  %v458_v26 = vmul.f32 %v1257_v55, %v417_v52 }
  0xbd   : > { %v473_v31 = vadd.f32 %v457_v21, %v391_v28  ;;  %v474_v33 = vadd.f32 %v458_v26, %v392_v29 }
  0xbf   : > { %v502_v59 = vpop.permute.xlu1 %501  ;;  %v537_v50 = vadd.f32 %v512_v23, %v473_v31  ;;  %v538_v51 = vadd.f32 %v512_v23, %v474_v33  ;;  %v1093_v33 = vld [vmem:[%s1437_s3] sm:$0xff]   ;;  %v1095_v23 = vld [vmem:[%s1437_s3 + $0x8] sm:$0xff]  }
  0xc0   : > { %v533_v61 = vadd.f32 %v502_v59, %v469_v32  ;;  %v534_v62 = vadd.f32 %v502_v59, %v470_v58  ;;  %v460_v32 = vmul.f32 %v1257_v55, %v1232_v24  ;;  %v313_v59 = vmul.f32 %v1247_v46, %v275_v19 }
  0xc2   : > { %v549_v3 = vmul.f32 0.2, %v533_v61  ;;  %v550_v4 = vmul.f32 0.2, %v534_v62 }
  0xc3   : > { %v507_v2 = vpop.permute.xlu1 %506 }
  0xc4   : > { %v535_v6 = vadd.f32 %v507_v2, %v471_v63  ;;  %v536_v7 = vadd.f32 %v507_v2, %v472_v0  ;;  %v565_v10 = vmax.f32 %v533_v61, %v549_v3  ;;  %v566_v11 = vmax.f32 %v534_v62, %v550_v4  ;;  %v527_v62 = vpop.permute.xlu0 %526 }
  0xc5   : > { %v475_v2 = vadd.f32 %v459_v25, %v393_v43  ;;  %v476_v3 = vadd.f32 %v460_v32, %v394_v48  ;;  %v553_v4 = vmul.f32 0.2, %v537_v50 }
  0xc6   : > { %v551_v8 = vmul.f32 0.2, %v535_v6  ;;  %v552_v49 = vmul.f32 0.2, %v536_v7 }
  0xc7   : > { %v280_v9 = vpop.permute.xlu1 %279 }
  0xc8   : > { %v567_v12 = vmax.f32 %v535_v6, %v551_v8  ;;  %v568_v13 = vmax.f32 %v536_v7, %v552_v49  ;;  %v315_v37 = vmul.f32 %v1247_v46, %v280_v9  ;;  %v316_v38 = vmul.f32 %v1249_v47, %v280_v9 }
  0xc9   : > { %v554_v6 = vmul.f32 0.2, %v538_v51 }
  0xca   : > { %v596_v14 = vpack.c.bf16 %v568_v13, %v566_v11  ;;  %v595_v15 = vpack.c.bf16 %v567_v12, %v565_v10  ;;  %v397_v41 = vadd.f32 %v381_v42, %v315_v37  ;;  %v398_v53 = vadd.f32 %v382_v34, %v316_v38  ;;  %v1096_v37 = vld [vmem:[%s1437_s3 + $0x28] sm:$0xff]   ;;  %v1097_v38 = vld [vmem:[%s1437_s3 + $0x10] sm:$0xff]   ;;  %v1100_v42 = vld [vmem:[%s1437_s3 + $0x38] sm:$0xff]  }
  0xcb   : > { %v569_v12 = vmax.f32 %v537_v50, %v553_v4  ;;  %v570_v13 = vmax.f32 %v538_v51, %v554_v6 }
  0xcc   : > { %v343_v20 = vpop.permute.xlu1 %342  ;;  %668 = vmatprep.subr.bf16.mxu0 %v596_v14  ;;  %1044 = vmatprep.subr.bf16.mxu1 %v596_v14 }
  0xcd   : > { %669 = vmatpush1.bf16.msra.mxu0 %v595_v15  ;;  %1048 = vmatpush1.bf16.msra.mxu1 %v595_v15  ;;  %v379_v58 = vmul.f32 %v1243_v44, %v343_v20  ;;  %v380_v36 = vmul.f32 %v1245_v45, %v343_v20 }
  0xcf   : > { %v395_v8 = vadd.f32 %v379_v58, %v313_v59  ;;  %v396_v45 = vadd.f32 %v380_v36, %v314_v60 }
  0xd1   : > { %v425_v35 = vpop.permute.xlu1 %424 }
  0xd2   : > { %v461_v63 = vmul.f32 %v1255_v54, %v425_v35  ;;  %v462_v0 = vmul.f32 %v1257_v55, %v425_v35  ;;  %v1094_v35 = vld [vmem:[%s1437_s3 + $0x20] sm:$0xff]  }
  0xd4   : > { %v477_v10 = vadd.f32 %v461_v63, %v395_v8  ;;  %v478_v11 = vadd.f32 %v462_v0, %v396_v45 }
  0xd5   : > { %v429_v52 = vpop.permute.xlu1 %428 }
  0xd6   : > { %v463_v56 = vmul.f32 %v1255_v54, %v429_v52  ;;  %v464_v57 = vmul.f32 %v1257_v55, %v429_v52 }
  0xd8   : > { %v479_v22 = vadd.f32 %v463_v56, %v397_v41  ;;  %v480_v61 = vadd.f32 %v464_v57, %v398_v53 }
  0xda   : > { %v543_v24 = vadd.f32 %v527_v62, %v479_v22  ;;  %v544_v7 = vadd.f32 %v527_v62, %v480_v61  ;;  %v517_v44 = vpop.permute.xlu1 %516 }
  0xdb   : > { %v539_v49 = vadd.f32 %v517_v44, %v475_v2  ;;  %v540_v46 = vadd.f32 %v517_v44, %v476_v3 }
  0xdc   : > { %v559_v54 = vmul.f32 0.2, %v543_v24  ;;  %v560_v14 = vmul.f32 0.2, %v544_v7 }
  0xdd   : > { %v555_v9 = vmul.f32 0.2, %v539_v49  ;;  %v556_v47 = vmul.f32 0.2, %v540_v46 }
  0xde   : > { %v522_v55 = vpop.permute.xlu1 %521  ;;  %v576_v26 = vmax.f32 %v544_v7, %v560_v14  ;;  %v575_v30 = vmax.f32 %v543_v24, %v559_v54 }
  0xdf   : > { %v571_v15 = vmax.f32 %v539_v49, %v555_v9  ;;  %v572_v1 = vmax.f32 %v540_v46, %v556_v47  ;;  %v541_v16 = vadd.f32 %v522_v55, %v477_v10  ;;  %v542_v17 = vadd.f32 %v522_v55, %v478_v11 }
  0xe1   : > { %v557_v18 = vmul.f32 0.2, %v541_v16  ;;  %v558_v19 = vmul.f32 0.2, %v542_v17  ;;  %v598_v20 = vpack.c.bf16 %v572_v1, %v570_v13  ;;  %v597_v21 = vpack.c.bf16 %v571_v15, %v569_v12 }
  0xe3   : > { %v573_v28 = vmax.f32 %v541_v16, %v557_v18  ;;  %v574_v29 = vmax.f32 %v542_v17, %v558_v19  ;;  %670 = vmatprep.subr.bf16.mxu0 %v598_v20  ;;  %1045 = vmatprep.subr.bf16.mxu1 %v598_v20 }
  0xe4   : > { %671 = vmatpush1.bf16.msra.mxu0 %v597_v21  ;;  %1049 = vmatpush1.bf16.msra.mxu1 %v597_v21 }
  0xe5   : > { %v600_v27 = vpack.c.bf16 %v576_v26, %v574_v29  ;;  %v599_v31 = vpack.c.bf16 %v575_v30, %v573_v28 }
  0xe7   : > { %672 = vmatprep.subr.bf16.mxu0 %v600_v27  ;;  %1046 = vmatprep.subr.bf16.mxu1 %v600_v27 }
  0xe8   : > { %673 = vmatpush1.bf16.msra.mxu0 %v599_v31  ;;  %1050 = vmatpush1.bf16.msra.mxu1 %v599_v31 }
  0xeb   : > { %1032 = vmatmul.mubr.msk.bf16.vlgmr.msra.gmra.mrb[0].mxu0 %vm641_vm0, %v1093_v33  ;;  %1036 = vmatmul.mubr.msk.bf16.vlgmr.msra.gmra.mrb[0].mxu1 %vm641_vm0, %v1094_v35 }
  0xec   : > { %708 = vmatprep.mubr.bf16.mxu0 %v1127_v5  ;;  %748 = vmatprep.mubr.bf16.mxu1 %v1127_v5 }
  0xf3   : > { %1033 = vmatmul.mubr.msk.bf16.gmra.mrb[4].mxu0 %vm641_vm0, %v1095_v23  ;;  %1037 = vmatmul.mubr.msk.bf16.gmra.mrb[4].mxu1 %vm641_vm0, %v1096_v37 }
  0xf4   : > { %718 = vmatprep.mubr.bf16.mxu0 %v1127_v5  ;;  %758 = vmatprep.mubr.bf16.mxu1 %v1127_v5 }
  0xfb   : > { %1034 = vmatmul.mubr.msk.bf16.gmra.mrb[8].mxu0 %vm641_vm0, %v1097_v38  ;;  %1038 = vmatmul.mubr.msk.bf16.gmra.mrb[8].mxu1 %vm641_vm0, %v1098_v39 }
  0xfc   : > { %728 = vmatprep.mubr.bf16.mxu0 %v1127_v5  ;;  %768 = vmatprep.mubr.bf16.mxu1 %v1127_v5 }
 0x103   : > { %1035 = vmatmul.mubr.msk.bf16.gmra.mrb[12].mxu0 %vm641_vm0, %v1099_v40  ;;  %1039 = vmatmul.mubr.msk.bf16.gmra.mrb[12].mxu1 %vm641_vm0, %v1100_v42 }
 0x1be   : > { %v700_v34 = vpop.f32.mrb[0].mxu0  ;;  %v740_v43 = vpop.f32.mrb[0].mxu1 }
 0x1bf   : > { %v844_v48 = vmul.f32 %v700_v34, %v700_v34  ;;  %v860_v50 = vmul.f32 %v740_v43, %v740_v43  ;;  %v702_v51 = vpop.f32.mrb[1].mxu0  ;;  %v742_v52 = vpop.f32.mrb[1].mxu1 }
 0x1c0   : > { %v845_v41 = vmul.f32 %v702_v51, %v702_v51  ;;  %v861_v5 = vmul.f32 %v742_v52, %v742_v52  ;;  %v704_v53 = vpop.f32.mrb[2].mxu0  ;;  %v744_v56 = vpop.f32.mrb[2].mxu1  ;;  %v803_v57 = vadd.f32 %v742_v52, %v740_v43  ;;  %v779_v25 = vadd.f32 %v702_v51, %v700_v34 }
 0x1c1   : > { %v846_v32 = vmul.f32 %v704_v53, %v704_v53  ;;  %v862_v58 = vmul.f32 %v744_v56, %v744_v56  ;;  %v706_v36 = vpop.f32.mrb[3].mxu0  ;;  %v746_v59 = vpop.f32.mrb[3].mxu1 }
 0x1c2   : > { %v847_v60 = vmul.f32 %v706_v36, %v706_v36  ;;  %v863_v22 = vmul.f32 %v746_v59, %v746_v59  ;;  %804 = vadd.xlane.f32.xlu0 %v803_v57  ;;  %780 = vadd.xlane.f32.xlu1 %v779_v25  ;;  %v806_v61 = vadd.f32 %v746_v59, %v744_v56 }
 0x1c3   : > { %v782_v62 = vadd.f32 %v706_v36, %v704_v53  ;;  %v876_v63 = vadd.f32 %v845_v41, %v844_v48  ;;  %v900_v0 = vadd.f32 %v861_v5, %v860_v50 }
 0x1c4   : > { %v879_v2 = vadd.f32 %v847_v60, %v846_v32  ;;  %v903_v3 = vadd.f32 %v863_v22, %v862_v58 }
 0x1c6   : > { %807 = vadd.xlane.f32.xlu1 %v806_v61  ;;  %783 = vadd.xlane.f32.xlu0 %v782_v62  ;;  %v710_v4 = vpop.f32.mrb[4].mxu0  ;;  %v750_v6 = vpop.f32.mrb[4].mxu1 }
 0x1c7   : > { %v848_v24 = vmul.f32 %v710_v4, %v710_v4  ;;  %v712_v7 = vpop.f32.mrb[5].mxu0  ;;  %v864_v44 = vmul.f32 %v750_v6, %v750_v6  ;;  %v752_v8 = vpop.f32.mrb[5].mxu1 }
 0x1c8   : > { %v849_v45 = vmul.f32 %v712_v7, %v712_v7  ;;  %v714_v49 = vpop.f32.mrb[6].mxu0  ;;  %v865_v46 = vmul.f32 %v752_v8, %v752_v8  ;;  %v754_v9 = vpop.f32.mrb[6].mxu1  ;;  %v785_v47 = vadd.f32 %v712_v7, %v710_v4  ;;  %v809_v10 = vadd.f32 %v752_v8, %v750_v6 }
 0x1c9   : > { %v850_v11 = vmul.f32 %v714_v49, %v714_v49  ;;  %v716_v12 = vpop.f32.mrb[7].mxu0  ;;  %v866_v13 = vmul.f32 %v754_v9, %v754_v9  ;;  %v756_v54 = vpop.f32.mrb[7].mxu1 }
 0x1ca   : > { %880 = vadd.xlane.f32.xlu1 %v879_v2  ;;  %877 = vadd.xlane.f32.xlu0 %v876_v63  ;;  %v851_v14 = vmul.f32 %v716_v12, %v716_v12  ;;  %v867_v55 = vmul.f32 %v756_v54, %v756_v54  ;;  %v788_v15 = vadd.f32 %v716_v12, %v714_v49 }
 0x1cb   : > { %v812_v1 = vadd.f32 %v756_v54, %v754_v9  ;;  %v882_v16 = vadd.f32 %v849_v45, %v848_v24  ;;  %v906_v17 = vadd.f32 %v865_v46, %v864_v44 }
 0x1cc   : > { %v885_v18 = vadd.f32 %v851_v14, %v850_v11  ;;  %v909_v19 = vadd.f32 %v867_v55, %v866_v13 }
 0x1ce   : > { %904 = vadd.xlane.f32.xlu1 %v903_v3  ;;  %901 = vadd.xlane.f32.xlu0 %v900_v0  ;;  %v720_v20 = vpop.f32.mrb[8].mxu0  ;;  %v760_v21 = vpop.f32.mrb[8].mxu1 }
 0x1cf   : > { %v852_v26 = vmul.f32 %v720_v20, %v720_v20  ;;  %v722_v28 = vpop.f32.mrb[9].mxu0  ;;  %v868_v29 = vmul.f32 %v760_v21, %v760_v21  ;;  %v762_v30 = vpop.f32.mrb[9].mxu1 }
 0x1d0   : > { %v853_v27 = vmul.f32 %v722_v28, %v722_v28  ;;  %v724_v31 = vpop.f32.mrb[10].mxu0  ;;  %v869_v33 = vmul.f32 %v762_v30, %v762_v30  ;;  %v764_v35 = vpop.f32.mrb[10].mxu1  ;;  %v791_v23 = vadd.f32 %v722_v28, %v720_v20  ;;  %v815_v37 = vadd.f32 %v762_v30, %v760_v21 }
 0x1d1   : > { %v854_v38 = vmul.f32 %v724_v31, %v724_v31  ;;  %v726_v39 = vpop.f32.mrb[11].mxu0  ;;  %v870_v40 = vmul.f32 %v764_v35, %v764_v35  ;;  %v766_v42 = vpop.f32.mrb[11].mxu1 }
 0x1d2   : > { %786 = vadd.xlane.f32.xlu0 %v785_v47  ;;  %789 = vadd.xlane.f32.xlu1 %v788_v15  ;;  %v855_v34 = vmul.f32 %v726_v39, %v726_v39  ;;  %v871_v43 = vmul.f32 %v766_v42, %v766_v42  ;;  %v794_v48 = vadd.f32 %v726_v39, %v724_v31 }
 0x1d3   : > { %v818_v50 = vadd.f32 %v766_v42, %v764_v35  ;;  %v888_v51 = vadd.f32 %v853_v27, %v852_v26  ;;  %v912_v52 = vadd.f32 %v869_v33, %v868_v29 }
 0x1d4   : > { %v891_v41 = vadd.f32 %v855_v34, %v854_v38  ;;  %v915_v5 = vadd.f32 %v871_v43, %v870_v40 }
 0x1d6   : > { %810 = vadd.xlane.f32.xlu0 %v809_v10  ;;  %813 = vadd.xlane.f32.xlu1 %v812_v1  ;;  %v730_v53 = vpop.f32.mrb[12].mxu0  ;;  %v770_v56 = vpop.f32.mrb[12].mxu1 }
 0x1d7   : > { %v856_v57 = vmul.f32 %v730_v53, %v730_v53  ;;  %v732_v25 = vpop.f32.mrb[13].mxu0  ;;  %v872_v32 = vmul.f32 %v770_v56, %v770_v56  ;;  %v772_v58 = vpop.f32.mrb[13].mxu1 }
 0x1d8   : > { %v857_v36 = vmul.f32 %v732_v25, %v732_v25  ;;  %v734_v59 = vpop.f32.mrb[14].mxu0  ;;  %v873_v60 = vmul.f32 %v772_v58, %v772_v58  ;;  %v774_v22 = vpop.f32.mrb[14].mxu1  ;;  %v797_v61 = vadd.f32 %v732_v25, %v730_v53  ;;  %v821_v62 = vadd.f32 %v772_v58, %v770_v56 }
 0x1d9   : > { %v858_v63 = vmul.f32 %v734_v59, %v734_v59  ;;  %v736_v0 = vpop.f32.mrb[15].mxu0  ;;  %v874_v2 = vmul.f32 %v774_v22, %v774_v22  ;;  %v776_v3 = vpop.f32.mrb[15].mxu1 }
 0x1da   : > { %883 = vadd.xlane.f32.xlu0 %v882_v16  ;;  %886 = vadd.xlane.f32.xlu1 %v885_v18  ;;  %v800_v4 = vadd.f32 %v736_v0, %v734_v59  ;;  %v859_v6 = vmul.f32 %v736_v0, %v736_v0  ;;  %v824_v24 = vadd.f32 %v776_v3, %v774_v22 }
 0x1db   : > { %v875_v7 = vmul.f32 %v776_v3, %v776_v3  ;;  %v894_v44 = vadd.f32 %v857_v36, %v856_v57  ;;  %v918_v8 = vadd.f32 %v873_v60, %v872_v32 }
 0x1dc   : > { %v897_v45 = vadd.f32 %v859_v6, %v858_v63 }
 0x1dd   : > { %v921_v49 = vadd.f32 %v875_v7, %v874_v2 }
 0x1de   : > { %907 = vadd.xlane.f32.xlu0 %v906_v17  ;;  %910 = vadd.xlane.f32.xlu1 %v909_v19 }
 0x1e2   : > { %792 = vadd.xlane.f32.xlu0 %v791_v23  ;;  %795 = vadd.xlane.f32.xlu1 %v794_v48 }
 0x1e6   : > { %816 = vadd.xlane.f32.xlu0 %v815_v37  ;;  %819 = vadd.xlane.f32.xlu1 %v818_v50 }
 0x1ea   : > { %889 = vadd.xlane.f32.xlu0 %v888_v51  ;;  %892 = vadd.xlane.f32.xlu1 %v891_v41 }
 0x1ee   : > { %913 = vadd.xlane.f32.xlu0 %v912_v52  ;;  %916 = vadd.xlane.f32.xlu1 %v915_v5 }
 0x1f2   : > { %798 = vadd.xlane.f32.xlu0 %v797_v61  ;;  %801 = vadd.xlane.f32.xlu1 %v800_v4 }
 0x1f6   : > { %822 = vadd.xlane.f32.xlu0 %v821_v62  ;;  %825 = vadd.xlane.f32.xlu1 %v824_v24 }
 0x1fa   : > { %895 = vadd.xlane.f32.xlu0 %v894_v44  ;;  %898 = vadd.xlane.f32.xlu1 %v897_v45 }
 0x1fe   : > { %919 = vadd.xlane.f32.xlu0 %v918_v8  ;;  %922 = vadd.xlane.f32.xlu1 %v921_v49 }
 0x24f   : > { %v805_v46 = vpop.xlane.xlu0 %804  ;;  %v781_v9 = vpop.xlane.xlu1 %780 }
 0x250   : > { %836 = vst.msk [vmem:[%s1359_s6 + $0x40] sm:$0xff] %vm827_vm1, %v805_v46  ;;  %828 = vst.msk [vmem:[%s1359_s6] sm:$0xff] %vm827_vm1, %v781_v9 }
 0x253   : > { %v808_v47 = vpop.xlane.xlu1 %807  ;;  %v784_v10 = vpop.xlane.xlu0 %783 }
 0x254   : > { %837 = vst.msk [vmem:[%s1359_s6 + $0x48] sm:$0xff] %vm827_vm1, %v808_v47  ;;  %829 = vst.msk [vmem:[%s1359_s6 + $0x8] sm:$0xff] %vm827_vm1, %v784_v10 }
 0x257   : > { %v881_v11 = vpop.xlane.xlu1 %880  ;;  %v878_v12 = vpop.xlane.xlu0 %877 }
 0x258   : > { %926 = vst.msk [vmem:[%s1359_s6 + $0x8] sm:$0xff] %vm924_vm2, %v881_v11  ;;  %925 = vst.msk [vmem:[%s1359_s6] sm:$0xff] %vm924_vm2, %v878_v12 }
 0x25b   : > { %v905_v13 = vpop.xlane.xlu1 %904  ;;  %v902_v54 = vpop.xlane.xlu0 %901 }
 0x25c   : > { %934 = vst.msk [vmem:[%s1359_s6 + $0x48] sm:$0xff] %vm924_vm2, %v905_v13  ;;  %933 = vst.msk [vmem:[%s1359_s6 + $0x40] sm:$0xff] %vm924_vm2, %v902_v54 }
 0x25f   : > { %v787_v14 = vpop.xlane.xlu0 %786  ;;  %v790_v55 = vpop.xlane.xlu1 %789 }
 0x260   : > { %830 = vst.msk [vmem:[%s1359_s6 + $0x10] sm:$0xff] %vm827_vm1, %v787_v14  ;;  %831 = vst.msk [vmem:[%s1359_s6 + $0x18] sm:$0xff] %vm827_vm1, %v790_v55 }
 0x263   : > { %v811_v15 = vpop.xlane.xlu0 %810  ;;  %v814_v1 = vpop.xlane.xlu1 %813 }
 0x264   : > { %838 = vst.msk [vmem:[%s1359_s6 + $0x50] sm:$0xff] %vm827_vm1, %v811_v15  ;;  %839 = vst.msk [vmem:[%s1359_s6 + $0x58] sm:$0xff] %vm827_vm1, %v814_v1 }
 0x267   : > { %v884_v16 = vpop.xlane.xlu0 %883  ;;  %v887_v17 = vpop.xlane.xlu1 %886 }
 0x268   : > { %927 = vst.msk [vmem:[%s1359_s6 + $0x10] sm:$0xff] %vm924_vm2, %v884_v16  ;;  %928 = vst.msk [vmem:[%s1359_s6 + $0x18] sm:$0xff] %vm924_vm2, %v887_v17 }
 0x26b   : > { %v908_v18 = vpop.xlane.xlu0 %907  ;;  %v911_v19 = vpop.xlane.xlu1 %910 }
 0x26c   : > { %935 = vst.msk [vmem:[%s1359_s6 + $0x50] sm:$0xff] %vm924_vm2, %v908_v18  ;;  %936 = vst.msk [vmem:[%s1359_s6 + $0x58] sm:$0xff] %vm924_vm2, %v911_v19 }
 0x26f   : > { %v793_v20 = vpop.xlane.xlu0 %792  ;;  %v796_v21 = vpop.xlane.xlu1 %795 }
 0x270   : > { %832 = vst.msk [vmem:[%s1359_s6 + $0x20] sm:$0xff] %vm827_vm1, %v793_v20  ;;  %833 = vst.msk [vmem:[%s1359_s6 + $0x28] sm:$0xff] %vm827_vm1, %v796_v21 }
 0x273   : > { %v817_v26 = vpop.xlane.xlu0 %816  ;;  %v820_v28 = vpop.xlane.xlu1 %819 }
 0x274   : > { %840 = vst.msk [vmem:[%s1359_s6 + $0x60] sm:$0xff] %vm827_vm1, %v817_v26  ;;  %841 = vst.msk [vmem:[%s1359_s6 + $0x68] sm:$0xff] %vm827_vm1, %v820_v28 }
 0x277   : > { %v890_v29 = vpop.xlane.xlu0 %889  ;;  %v893_v30 = vpop.xlane.xlu1 %892 }
 0x278   : > { %929 = vst.msk [vmem:[%s1359_s6 + $0x20] sm:$0xff] %vm924_vm2, %v890_v29  ;;  %930 = vst.msk [vmem:[%s1359_s6 + $0x28] sm:$0xff] %vm924_vm2, %v893_v30 }
 0x27b   : > { %v914_v27 = vpop.xlane.xlu0 %913  ;;  %v917_v31 = vpop.xlane.xlu1 %916 }
 0x27c   : > { %937 = vst.msk [vmem:[%s1359_s6 + $0x60] sm:$0xff] %vm924_vm2, %v914_v27  ;;  %938 = vst.msk [vmem:[%s1359_s6 + $0x68] sm:$0xff] %vm924_vm2, %v917_v31 }
 0x27f   : > { %v799_v33 = vpop.xlane.xlu0 %798  ;;  %v802_v35 = vpop.xlane.xlu1 %801 }
 0x280   : > { %834 = vst.msk [vmem:[%s1359_s6 + $0x30] sm:$0xff] %vm827_vm1, %v799_v33  ;;  %835 = vst.msk [vmem:[%s1359_s6 + $0x38] sm:$0xff] %vm827_vm1, %v802_v35 }
 0x283   : > { %v823_v23 = vpop.xlane.xlu0 %822  ;;  %v826_v37 = vpop.xlane.xlu1 %825 }
 0x284   : > { %842 = vst.msk [vmem:[%s1359_s6 + $0x70] sm:$0xff] %vm827_vm1, %v823_v23  ;;  %843 = vst.msk [vmem:[%s1359_s6 + $0x78] sm:$0xff] %vm827_vm1, %v826_v37 }
 0x287   : > { %v896_v38 = vpop.xlane.xlu0 %895  ;;  %v899_v39 = vpop.xlane.xlu1 %898 }
 0x288   : > { %931 = vst.msk [vmem:[%s1359_s6 + $0x30] sm:$0xff] %vm924_vm2, %v896_v38  ;;  %932 = vst.msk [vmem:[%s1359_s6 + $0x38] sm:$0xff] %vm924_vm2, %v899_v39 }
 0x28b   : > { %v920_v40 = vpop.xlane.xlu0 %919  ;;  %v923_v42 = vpop.xlane.xlu1 %922 }
 0x28c   : > { %939 = vst.msk [vmem:[%s1359_s6 + $0x70] sm:$0xff] %vm924_vm2, %v920_v40  ;;  %940 = vst.msk [vmem:[%s1359_s6 + $0x78] sm:$0xff] %vm924_vm2, %v923_v42 }
 0x28d PF: > { %s14_s17 = sadd.s32 1, %s1123_s17   ;;  %s1439_s15 = smov %s1119_s16 }
 0x28e   : > { %p11_p6 = scmp.ge.s32.totalorder %s14_s17, 4   ;;  %s1440_s16 = smov %s1442_s18 }
 0x290   :  { %13 = sbr.rel (!%p11_p6) target bundleno = 2 (0x2), region = 66 }

// kernel: pixel_discriminator_forward.3
= control target key start
LH: loop header
LB: loop body
LE: loop exit
PB: predicated region body
PF: predicated region fallthrough
CT: control target
= control target key end

     0   :  { %s1491_s24 = smov 0   ;;  %s1493_s25 = smov 0   ;;  %s1858_s0 = inlined_call_operand.vmem [shape: f32[2,3,256], index: 0, kind: input, shape index: {}]   ;;  %s1859_s1 = inlined_call_operand.vmem [shape: f32[64,3], index: 1, kind: input, shape index: {}]   ;;  %s1860_s2 = inlined_call_operand.vmem [shape: f32[64,1], index: 2, kind: input, shape index: {}]   ;;  %s1861_s3 = inlined_call_operand.vmem [shape: bf16[128,64], index: 3, kind: input, shape index: {}]   ;;  %s1862_s4 = inlined_call_operand.vmem [shape: f32[128,1], index: 4, kind: input, shape index: {}]   ;;  %s1863_s5 = inlined_call_operand.vmem [shape: f32[128,1], index: 5, kind: input, shape index: {}]   ;;  %s1864_s6 = inlined_call_operand.vmem [shape: bf16[8,128], index: 6, kind: input, shape index: {}]   ;;  %s1865_s7 = inlined_call_operand.vmem [shape: f32[2,1,256], index: 7, kind: output, shape index: {}]  }
   0x1   :  { %s1495_s26 = smov 0  }
   0x2 LB: > { %s29_s27 = sadd.s32 1, %s1441_s25  ;;  %p1349_p0 = scmp.ge.s32.totalorder %s1445_s26, 1  ;;  %s1445_s26 = sphi %s1495_s26, %s17_s26   ;;  %s1441_s25 = sphi %s1493_s25, %s1867_s25   ;;  %s1437_s24 = sphi %s1491_s24, %s1866_s24  }
   0x3   : > { %p31_p1 = scmp.ge.s32.totalorder %s29_s27, 2  ;;  %p258_p2 = scmp.lt.s32.totalorder %s1445_s26, 3 }
   0x5   : > { %s1869_s27 = smov (%p31_p1, %s29_s27), 0  ;;  %p259_p3 = pnand %p1349_p0, %p258_p2 }
   0x6   : > { %v318_v0 = vld [vmem:[%s1859_s1] sm:$0xff] (!%p259_p3)  ;;  %v1447_v1 = vmov (!%p259_p3), 2   ;;  %v1448_v2 = vmov (!%p259_p3), 1   ;;  %v320_v3 = vld [vmem:[%s1859_s1 + $0x10] sm:$0xff] (!%p259_p3)  ;;  %v319_v4 = vld [vmem:[%s1859_s1 + $0x8] sm:$0xff] (!%p259_p3)  ;;  %v1449_v5 = vmov (!%p259_p3), 0   ;;  %v367_v51 = vlaneseq (!%p259_p3) }
   0x7   : > { %262 = sbr.rel (%p259_p3) target bundleno = 740 (0x2e4), region = 48  ;;  %1401 = vset.pattern.permute.xlu0 (!%p259_p3), %v1447_v1  ;;  %1400 = vset.pattern.permute.xlu1 (!%p259_p3), %v1448_v2  ;;  %v323_v6 = vld [vmem:[%s1859_s1 + $0x28] sm:$0xff] (!%p259_p3)  ;;  %v322_v7 = vld [vmem:[%s1859_s1 + $0x20] sm:$0xff] (!%p259_p3)  ;;  %v325_v8 = vld [vmem:[%s1859_s1 + $0x38] sm:$0xff] (!%p259_p3)  ;;  %p298_p4 = scmp.lt.s32.totalorder (!%p259_p3), %s1437_s24, 1  ;;  %vm725_vm0 = vcmask (!%p259_p3), 523264  }
   0x8   : > { %484 = vperm.xlu0 (!%p259_p3), %1401, %v318_v0   ;;  %402 = vperm.xlu1 (!%p259_p3), %1400, %v318_v0   ;;  %v321_v9 = vld [vmem:[%s1859_s1 + $0x18] sm:$0xff] (!%p259_p3)  ;;  %v565_v10 = vld [vmem:[%s1860_s2] sm:$0xff] (!%p259_p3)  ;;  %v566_v11 = vld [vmem:[%s1860_s2 + $0x8] sm:$0xff] (!%p259_p3)  ;;  %v1673_v55 = vshrl.u32 (!%p259_p3), %v367_v51, 7  ;;  %vm1261_vm1 = vcmp.lt.s32.totalorder (!%p259_p3), %v367_v51, 256 }
   0x9   : > { %782 = vmatprep.mubr.bf16.mxu0 (!%p259_p3), %v1449_v5  ;;  %1232 = vmatprep.mubr.bf16.mxu1 (!%p259_p3), %v1449_v5  ;;  %v324_v12 = vld [vmem:[%s1859_s1 + $0x30] sm:$0xff] (!%p259_p3)  ;;  %v569_v13 = vld [vmem:[%s1860_s2 + $0x20] sm:$0xff] (!%p259_p3)  ;;  %v572_v14 = vld [vmem:[%s1860_s2 + $0x38] sm:$0xff] (!%p259_p3) }
   0xa   : > { %v864_v15 = vld [vmem:[%s1862_s4 + $0x8] sm:$0xff] (!%p259_p3)  ;;  %v567_v17 = vld [vmem:[%s1860_s2 + $0x10] sm:$0xff] (!%p259_p3)  ;;  %v866_v18 = vld [vmem:[%s1862_s4 + $0x18] sm:$0xff] (!%p259_p3)  ;;  %v435_v58 = vsub.s32 (!%p259_p3), 1, %v1673_v55  ;;  %v439_v59 = vsub.s32 (!%p259_p3), 5, %v1673_v55  ;;  %v369_v60 = vsub.s32 (!%p259_p3), 0, %v1673_v55 }
   0xb   : > { %v992_v16 = vld [vmem:[%s1863_s5 + $0x8] sm:$0xff] (!%p259_p3)  ;;  %v568_v19 = vld [vmem:[%s1860_s2 + $0x18] sm:$0xff] (!%p259_p3)  ;;  %v571_v28 = vld [vmem:[%s1860_s2 + $0x30] sm:$0xff] (!%p259_p3)  ;;  %v373_v61 = vsub.s32 (!%p259_p3), 4, %v1673_v55 }
   0xc   : > { %492 = vperm.xlu0 (!%p259_p3), %1401, %v320_v3   ;;  %406 = vperm.xlu1 (!%p259_p3), %1400, %v319_v4   ;;  %v994_v20 = vld [vmem:[%s1863_s5 + $0x18] sm:$0xff] (!%p259_p3)  ;;  %v868_v21 = vld [vmem:[%s1862_s4 + $0x28] sm:$0xff] (!%p259_p3)  ;;  %v863_v30 = vld [vmem:[%s1862_s4] sm:$0xff] (!%p259_p3) }
   0xd   : > { %v996_v22 = vld [vmem:[%s1863_s5 + $0x28] sm:$0xff] (!%p259_p3)  ;;  %v870_v23 = vld [vmem:[%s1862_s4 + $0x38] sm:$0xff] (!%p259_p3)  ;;  %v991_v32 = vld [vmem:[%s1863_s5] sm:$0xff] (!%p259_p3) }
   0xe   : > { %v998_v24 = vld [vmem:[%s1863_s5 + $0x38] sm:$0xff]  ;;  %v872_v25 = vld [vmem:[%s1862_s4 + $0x48] sm:$0xff]  ;;  %v865_v34 = vld [vmem:[%s1862_s4 + $0x10] sm:$0xff]  ;;  %s1871_s24 = smov (!%p298_p4, %s1437_s24), 1 }
   0xf   : > { %v570_v26 = vld [vmem:[%s1860_s2 + $0x28] sm:$0xff]  ;;  %v874_v29 = vld [vmem:[%s1862_s4 + $0x58] sm:$0xff]  ;;  %v993_v36 = vld [vmem:[%s1863_s5 + $0x10] sm:$0xff]  ;;  %s1371_s17 = sshll.u32 %s1871_s24, 3  ;;  %s1352_s9 = sshll.u32 %s1871_s24, 1 }
  0x10   : > { %504 = vperm.xlu0 %1401, %v323_v6   ;;  %1402 = vset.pattern.permute.xlu1 %v1447_v1  ;;  %v1000_v27 = vld [vmem:[%s1863_s5 + $0x48] sm:$0xff]  ;;  %v1002_v31 = vld [vmem:[%s1863_s5 + $0x58] sm:$0xff]  ;;  %v867_v38 = vld [vmem:[%s1862_s4 + $0x20] sm:$0xff]  ;;  %s305_s22 = scalar_lea.vmem %s1858_s0, %s1371_s17  ;;  %s314_s12 = scalar_lea.vmem %s1865_s7, %s1352_s9 }
  0x11   : > { %488 = vperm.xlu1 %1402, %v319_v4   ;;  %v876_v33 = vld [vmem:[%s1862_s4 + $0x68] sm:$0xff]  ;;  %v878_v37 = vld [vmem:[%s1862_s4 + $0x78] sm:$0xff]  ;;  %v995_v40 = vld [vmem:[%s1863_s5 + $0x20] sm:$0xff] }
  0x12   : > { %v1004_v35 = vld [vmem:[%s1863_s5 + $0x68] sm:$0xff]  ;;  %v1006_v39 = vld [vmem:[%s1863_s5 + $0x78] sm:$0xff]  ;;  %v869_v41 = vld [vmem:[%s1862_s4 + $0x30] sm:$0xff] }
  0x13   : > { %v997_v42 = vld [vmem:[%s1863_s5 + $0x30] sm:$0xff]  ;;  %v871_v43 = vld [vmem:[%s1862_s4 + $0x40] sm:$0xff] }
  0x14   : > { %1409 = vset.pattern.permute.xlu0 %v1448_v2  ;;  %v999_v44 = vld [vmem:[%s1863_s5 + $0x40] sm:$0xff]  ;;  %v873_v47 = vld [vmem:[%s1862_s4 + $0x50] sm:$0xff] }
  0x15   : > { %418 = vperm.xlu0 %1409, %v322_v7   ;;  %1403 = vset.pattern.permute.xlu1 %v1449_v5  ;;  %v1001_v50 = vld [vmem:[%s1863_s5 + $0x50] sm:$0xff]  ;;  %v875_v54 = vld [vmem:[%s1862_s4 + $0x60] sm:$0xff] }
  0x16   : > { %338 = vperm.xlu1 %1403, %v320_v3   ;;  %v1003_v57 = vld [vmem:[%s1863_s5 + $0x60] sm:$0xff] }
  0x17   : > { %v317_v63 = vld [vmem:[%s305_s22] sm:$0x77] }
  0x19   : > { %430 = vperm.xlu0 %1409, %v325_v8  }
  0x1a   : > { %1404 = vset.pattern.permute.xlu1 %v1448_v2 }
  0x1b   : > { %410 = vperm.xlu1 %1404, %v320_v3   ;;  %v877_v3 = vld [vmem:[%s1862_s4 + $0x70] sm:$0xff] }
  0x1d   : > { %1412 = vset.pattern.permute.xlu0 %v1449_v5 }
  0x1e   : > { %328 = vperm.xlu0 %1412, %v318_v0   ;;  %v517_v0 = vsub.s32 2, %v1673_v55 }
  0x1f   : > { %414 = vperm.xlu1 %1404, %v321_v9  }
  0x22   : > { %333 = vperm.xlu0 %1412, %v319_v4   ;;  %v436_v4 = vrot.slane %v317_v63, %v435_v58 }
  0x23   : > { %1405 = vset.pattern.permute.xlu1 %v1447_v1 }
  0x24   : > { %496 = vperm.xlu1 %1405, %v321_v9  }
  0x26   : > { %343 = vperm.xlu0 %1412, %v321_v9  }
  0x28   : > { %1406 = vset.pattern.permute.xlu1 %v1449_v5 }
  0x29   : > { %575 = vperm.xlu1 %1406, %v565_v10   ;;  %v518_v10 = vrot.slane %v317_v63, %v517_v0 }
  0x2a   : > { %580 = vperm.xlu0 %1412, %v566_v11  }
  0x2d   : > { %348 = vperm.xlu1 %1406, %v322_v7  }
  0x2e   : > { %358 = vperm.xlu0 %1412, %v324_v12  }
  0x31   : > { %353 = vperm.xlu1 %1406, %v323_v6  }
  0x32   : > { %595 = vperm.xlu0 %1412, %v569_v13   ;;  %v1699_v13 = vrot.slane %v436_v4, %v435_v58 }
  0x35   : > { %1407 = vset.pattern.permute.xlu1 %v1448_v2 }
  0x36   : > { %610 = vperm.xlu0 %1412, %v572_v14   ;;  %422 = vperm.xlu1 %1407, %v323_v6   ;;  %v440_v6 = vrot.slane %v317_v63, %v439_v59 }
  0x38   : > { %v1701_v14 = vrot.slane %v440_v6, %v435_v58 }
  0x3a   : > { %886 = vperm.xlu0 %1412, %v864_v15   ;;  %1408 = vset.pattern.permute.xlu1 %v1447_v1 }
  0x3b   : > { %500 = vperm.xlu1 %1408, %v322_v7   ;;  %v370_v7 = vrot.slane %v317_v63, %v369_v60 }
  0x3d   : > { %v1703_v15 = vrot.slane %v370_v7, %v369_v60 }
  0x3e   : > { %1014 = vperm.xlu0 %1412, %v992_v16  }
  0x3f   : > { %1410 = vset.pattern.permute.xlu1 %v1449_v5 }
  0x40   : > { %585 = vperm.xlu1 %1410, %v567_v17  }
  0x42   : > { %896 = vperm.xlu0 %1412, %v866_v18  }
  0x44   : > { %590 = vperm.xlu1 %1410, %v568_v19  }
  0x46   : > { %1024 = vperm.xlu0 %1412, %v994_v20  }
  0x48   : > { %363 = vperm.xlu1 %1410, %v325_v8  }
  0x4a   : > { %906 = vperm.xlu0 %1412, %v868_v21  }
  0x4c   : > { %1411 = vset.pattern.permute.xlu1 %v1448_v2 }
  0x4d   : > { %426 = vperm.xlu1 %1411, %v324_v12  }
  0x4e   : > { %1034 = vperm.xlu0 %1412, %v996_v22  }
  0x51   : > { %1413 = vset.pattern.permute.xlu1 %v1447_v1  ;;  %v521_v1 = vsub.s32 6, %v1673_v55 }
  0x52   : > { %916 = vperm.xlu0 %1412, %v870_v23   ;;  %508 = vperm.xlu1 %1413, %v324_v12   ;;  %v1005_v12 = vld [vmem:[%s1863_s5 + $0x70] sm:$0xff]  ;;  %v1711_v23 = vrot.slane %v518_v10, %v517_v0 }
  0x53   : > { %v522_v11 = vrot.slane %v317_v63, %v521_v1 }
  0x56   : > { %1044 = vperm.xlu0 %1412, %v998_v24   ;;  %512 = vperm.xlu1 %1413, %v325_v8   ;;  %v374_v8 = vrot.slane %v317_v63, %v373_v61  ;;  %v1713_v24 = vrot.slane %v522_v11, %v517_v0 }
  0x58   : > { %v1705_v16 = vrot.slane %v374_v8, %v369_v60 }
  0x5a   : > { %926 = vperm.xlu0 %1412, %v872_v25   ;;  %1414 = vset.pattern.permute.xlu1 %v1449_v5 }
  0x5b   : > { %600 = vperm.xlu1 %1414, %v570_v26  }
  0x5e   : > { %1054 = vperm.xlu0 %1412, %v1000_v27  }
  0x5f   : > { %605 = vperm.xlu1 %1414, %v571_v28  }
  0x62   : > { %936 = vperm.xlu0 %1412, %v874_v29  }
  0x63   : > { %881 = vperm.xlu1 %1414, %v863_v30  }
  0x66   : > { %1064 = vperm.xlu0 %1412, %v1002_v31  }
  0x67   : > { %1009 = vperm.xlu1 %1414, %v991_v32  }
  0x6a   : > { %946 = vperm.xlu0 %1412, %v876_v33  }
  0x6b   : > { %891 = vperm.xlu1 %1414, %v865_v34  }
  0x6e   : > { %1074 = vperm.xlu0 %1412, %v1004_v35  }
  0x6f   : > { %1019 = vperm.xlu1 %1414, %v993_v36  }
  0x72   : > { %956 = vperm.xlu0 %1412, %v878_v37  }
  0x73   : > { %901 = vperm.xlu1 %1414, %v867_v38  }
  0x76   : > { %1084 = vperm.xlu0 %1412, %v1006_v39  }
  0x77   : > { %1029 = vperm.xlu1 %1414, %v995_v40  }
  0x7b   : > { %911 = vperm.xlu1 %1414, %v869_v41  }
  0x7f   : > { %1039 = vperm.xlu1 %1414, %v997_v42  }
  0x83   : > { %921 = vperm.xlu1 %1414, %v871_v43  }
  0x87   : > { %1049 = vperm.xlu1 %1414, %v999_v44   ;;  %v403_v45 = vpop.permute.xlu1 %402  ;;  %v485_v46 = vpop.permute.xlu0 %484 }
  0x88   : > { %v451_v21 = vmul.f32 %v1699_v13, %v403_v45  ;;  %v452_v22 = vmul.f32 %v1701_v14, %v403_v45  ;;  %v533_v30 = vmul.f32 %v1711_v23, %v485_v46  ;;  %v534_v31 = vmul.f32 %v1713_v24, %v485_v46 }
  0x8b   : > { %931 = vperm.xlu1 %1414, %v873_v47   ;;  %v407_v48 = vpop.permute.xlu1 %406  ;;  %v1658_v49 = vpop.permute.xlu0 %492 }
  0x8c   : > { %v453_v26 = vmul.f32 %v1699_v13, %v407_v48  ;;  %v454_v27 = vmul.f32 %v1701_v14, %v407_v48 }
  0x8f   : > { %1059 = vperm.xlu1 %1414, %v1001_v50   ;;  %v1666_v52 = vpop.permute.xlu0 %504 }
  0x90   : > { %v489_v53 = vpop.permute.xlu1 %488 }
  0x91   : > { %v535_v38 = vmul.f32 %v1711_v23, %v489_v53  ;;  %v536_v39 = vmul.f32 %v1713_v24, %v489_v53 }
  0x93   : > { %941 = vperm.xlu1 %1414, %v875_v54  }
  0x94   : > { %v1678_v56 = vpop.permute.xlu0 %418 }
  0x95   : > { %v1687_v62 = vpop.permute.xlu1 %338 }
  0x96   : > { %v389_v10 = vmul.f32 %v1703_v15, %v1687_v62  ;;  %v390_v11 = vmul.f32 %v1705_v16, %v1687_v62 }
  0x97   : > { %1069 = vperm.xlu1 %1414, %v1003_v57  }
  0x98   : > { %v1691_v2 = vpop.permute.xlu0 %430 }
  0x9a   : > { %v411_v9 = vpop.permute.xlu1 %410 }
  0x9b   : > { %951 = vperm.xlu1 %1414, %v877_v3   ;;  %v455_v7 = vmul.f32 %v1699_v13, %v411_v9  ;;  %v456_v8 = vmul.f32 %v1701_v14, %v411_v9 }
  0x9d   : > { %v329_v17 = vpop.permute.xlu0 %328 }
  0x9e   : > { %v415_v18 = vpop.permute.xlu1 %414  ;;  %v385_v19 = vmul.f32 %v1703_v15, %v329_v17  ;;  %v386_v20 = vmul.f32 %v1705_v16, %v329_v17  ;;  %v538_v17 = vmul.f32 %v1713_v24, %v1658_v49 }
  0x9f   : > { %1079 = vperm.xlu1 %1414, %v1005_v12   ;;  %v537_v12 = vmul.f32 %v1711_v23, %v1658_v49  ;;  %v457_v9 = vmul.f32 %v1699_v13, %v415_v18 }
  0xa0   : > { %v467_v32 = vadd.f32 %v451_v21, %v385_v19  ;;  %v468_v33 = vadd.f32 %v452_v22, %v386_v20  ;;  %v471_v19 = vadd.f32 %v455_v7, %v389_v10  ;;  %v472_v20 = vadd.f32 %v456_v8, %v390_v11 }
  0xa1   : > { %v334_v25 = vpop.permute.xlu0 %333 }
  0xa2   : > { %v387_v28 = vmul.f32 %v1703_v15, %v334_v25  ;;  %v388_v29 = vmul.f32 %v1705_v16, %v334_v25  ;;  %v549_v40 = vadd.f32 %v533_v30, %v467_v32  ;;  %v550_v41 = vadd.f32 %v534_v31, %v468_v33 }
  0xa3   : > { %v497_v34 = vpop.permute.xlu1 %496  ;;  %v553_v62 = vadd.f32 %v537_v12, %v471_v19 }
  0xa4   : > { %v469_v35 = vadd.f32 %v453_v26, %v387_v28  ;;  %v470_v36 = vadd.f32 %v454_v27, %v388_v29  ;;  %v458_v26 = vmul.f32 %v1701_v14, %v415_v18  ;;  %v554_v29 = vadd.f32 %v538_v17, %v472_v20 }
  0xa5   : > { %v344_v37 = vpop.permute.xlu0 %343  ;;  %v539_v31 = vmul.f32 %v1711_v23, %v497_v34  ;;  %v540_v49 = vmul.f32 %v1713_v24, %v497_v34  ;;  %v459_v34 = vmul.f32 %v1699_v13, %v1678_v56  ;;  %v465_v20 = vmul.f32 %v1699_v13, %v1691_v2 }
  0xa6   : > { %v551_v43 = vadd.f32 %v535_v38, %v469_v35  ;;  %v552_v44 = vadd.f32 %v536_v39, %v470_v36  ;;  %v391_v21 = vmul.f32 %v1703_v15, %v344_v37  ;;  %v392_v22 = vmul.f32 %v1705_v16, %v344_v37 }
  0xa8   : > { %v576_v42 = vpop.permute.xlu1 %575  ;;  %v473_v27 = vadd.f32 %v457_v9, %v391_v21  ;;  %v474_v28 = vadd.f32 %v458_v26, %v392_v22 }
  0xa9   : > { %v613_v45 = vadd.f32 %v576_v42, %v549_v40  ;;  %v614_v47 = vadd.f32 %v576_v42, %v550_v41  ;;  %v581_v48 = vpop.permute.xlu0 %580 }
  0xaa   : > { %v615_v50 = vadd.f32 %v581_v48, %v551_v43  ;;  %v616_v46 = vadd.f32 %v581_v48, %v552_v44  ;;  %v555_v35 = vadd.f32 %v539_v31, %v473_v27  ;;  %v556_v36 = vadd.f32 %v540_v49, %v474_v28 }
  0xab   : > { %v629_v54 = vmul.f32 0.2, %v613_v45  ;;  %v630_v57 = vmul.f32 0.2, %v614_v47 }
  0xac   : > { %v631_v58 = vmul.f32 0.2, %v615_v50  ;;  %v632_v59 = vmul.f32 0.2, %v616_v46  ;;  %v349_v60 = vpop.permute.xlu1 %348 }
  0xad   : > { %v646_v61 = vmax.f32 %v614_v47, %v630_v57  ;;  %v645_v63 = vmax.f32 %v613_v45, %v629_v54  ;;  %v460_v54 = vmul.f32 %v1701_v14, %v1678_v56  ;;  %v393_v57 = vmul.f32 %v1703_v15, %v349_v60 }
  0xae   : > { %v648_v0 = vmax.f32 %v616_v46, %v632_v59  ;;  %v647_v1 = vmax.f32 %v615_v50, %v631_v58  ;;  %v394_v58 = vmul.f32 %v1705_v16, %v349_v60 }
  0xb0   : > { %v1723_v53 = vpop.permute.xlu1 %353  ;;  %v678_v3 = vpack.c.bf16 %v648_v0, %v646_v61  ;;  %v677_v4 = vpack.c.bf16 %v647_v1, %v645_v63  ;;  %v359_v61 = vpop.permute.xlu0 %358  ;;  %v475_v1 = vadd.f32 %v459_v34, %v393_v57 }
  0xb1   : > { %v395_v12 = vmul.f32 %v1703_v15, %v1723_v53  ;;  %v396_v17 = vmul.f32 %v1705_v16, %v1723_v53  ;;  %v543_v53 = vmul.f32 %v1711_v23, %v1666_v52  ;;  %v397_v49 = vmul.f32 %v1703_v15, %v359_v61 }
  0xb2   : > { %750 = vmatprep.subr.bf16.mxu0 %v678_v3  ;;  %v476_v3 = vadd.f32 %v460_v54, %v394_v58 }
  0xb3   : > { %751 = vmatpush1.bf16.msra.mxu0 %v677_v4 }
  0xb4   : > { %v596_v19 = vpop.permute.xlu0 %595 }
  0xb5   : > { %v423_v6 = vpop.permute.xlu1 %422 }
  0xb6   : > { %v461_v4 = vmul.f32 %v1699_v13, %v423_v6  ;;  %v462_v7 = vmul.f32 %v1701_v14, %v423_v6  ;;  %v466_v6 = vmul.f32 %v1701_v14, %v1691_v2 }
  0xb8   : > { %v477_v21 = vadd.f32 %v461_v4, %v395_v12  ;;  %v478_v22 = vadd.f32 %v462_v7, %v396_v17  ;;  %v1417_v12 = vld [vmem:[%s1861_s3 + $0x10] sm:$0xff]   ;;  %v1418_v17 = vld [vmem:[%s1861_s3 + $0x18] sm:$0xff]  }
  0xba   : > { %v501_v25 = vpop.permute.xlu1 %500 }
  0xbb   : > { %v541_v63 = vmul.f32 %v1711_v23, %v501_v25  ;;  %v542_v0 = vmul.f32 %v1713_v24, %v501_v25 }
  0xbd   : > { %v557_v8 = vadd.f32 %v541_v63, %v475_v1  ;;  %v558_v56 = vadd.f32 %v542_v0, %v476_v3 }
  0xbf   : > { %v586_v30 = vpop.permute.xlu1 %585  ;;  %v621_v25 = vadd.f32 %v596_v19, %v557_v8  ;;  %v622_v9 = vadd.f32 %v596_v19, %v558_v56  ;;  %v1419_v19 = vld [vmem:[%s1861_s3 + $0x20] sm:$0xff]  }
  0xc0   : > { %v617_v32 = vadd.f32 %v586_v30, %v553_v62  ;;  %v618_v33 = vadd.f32 %v586_v30, %v554_v29  ;;  %v544_v30 = vmul.f32 %v1713_v24, %v1666_v52 }
  0xc2   : > { %v633_v37 = vmul.f32 0.2, %v617_v32  ;;  %v634_v39 = vmul.f32 0.2, %v618_v33 }
  0xc3   : > { %v591_v38 = vpop.permute.xlu1 %590 }
  0xc4   : > { %v619_v40 = vadd.f32 %v591_v38, %v555_v35  ;;  %v620_v41 = vadd.f32 %v591_v38, %v556_v36  ;;  %v649_v44 = vmax.f32 %v617_v32, %v633_v37  ;;  %v650_v45 = vmax.f32 %v618_v33, %v634_v39  ;;  %v611_v36 = vpop.permute.xlu0 %610 }
  0xc5   : > { %v398_v32 = vmul.f32 %v1705_v16, %v359_v61  ;;  %v559_v39 = vadd.f32 %v543_v53, %v477_v21  ;;  %v1422_v21 = vld [vmem:[%s1861_s3 + $0x38] sm:$0xff]  }
  0xc6   : > { %v635_v42 = vmul.f32 0.2, %v619_v40  ;;  %v636_v18 = vmul.f32 0.2, %v620_v41 }
  0xc7   : > { %v364_v43 = vpop.permute.xlu1 %363 }
  0xc8   : > { %v651_v47 = vmax.f32 %v619_v40, %v635_v42  ;;  %v652_v48 = vmax.f32 %v620_v41, %v636_v18  ;;  %v399_v11 = vmul.f32 %v1703_v15, %v364_v43  ;;  %v400_v60 = vmul.f32 %v1705_v16, %v364_v43 }
  0xc9   : > { %v560_v40 = vadd.f32 %v544_v30, %v478_v22  ;;  %v637_v41 = vmul.f32 0.2, %v621_v25  ;;  %v638_v42 = vmul.f32 0.2, %v622_v9 }
  0xca   : > { %v680_v50 = vpack.c.bf16 %v652_v48, %v650_v45  ;;  %v679_v46 = vpack.c.bf16 %v651_v47, %v649_v44  ;;  %v481_v27 = vadd.f32 %v465_v20, %v399_v11  ;;  %v482_v28 = vadd.f32 %v466_v6, %v400_v60  ;;  %v1415_v11 = vld [vmem:[%s1861_s3] sm:$0xff]   ;;  %v1416_v60 = vld [vmem:[%s1861_s3 + $0x8] sm:$0xff]   ;;  %v1421_v6 = vld [vmem:[%s1861_s3 + $0x30] sm:$0xff]  }
  0xcb   : > { %v654_v34 = vmax.f32 %v622_v9, %v638_v42  ;;  %v1420_v20 = vld [vmem:[%s1861_s3 + $0x28] sm:$0xff]  }
  0xcc   : > { %v427_v59 = vpop.permute.xlu1 %426  ;;  %752 = vmatprep.subr.bf16.mxu0 %v680_v50 }
  0xcd   : > { %753 = vmatpush1.bf16.msra.mxu0 %v679_v46  ;;  %v463_v31 = vmul.f32 %v1699_v13, %v427_v59  ;;  %v464_v2 = vmul.f32 %v1701_v14, %v427_v59 }
  0xcf   : > { %v479_v43 = vadd.f32 %v463_v31, %v397_v49  ;;  %v480_v14 = vadd.f32 %v464_v2, %v398_v32 }
  0xd1   : > { %v509_v10 = vpop.permute.xlu1 %508 }
  0xd2   : > { %v545_v38 = vmul.f32 %v1711_v23, %v509_v10  ;;  %v546_v37 = vmul.f32 %v1713_v24, %v509_v10 }
  0xd4   : > { %v561_v47 = vadd.f32 %v545_v38, %v479_v43  ;;  %v562_v48 = vadd.f32 %v546_v37, %v480_v14 }
  0xd5   : > { %v513_v26 = vpop.permute.xlu1 %512 }
  0xd6   : > { %v547_v62 = vmul.f32 %v1711_v23, %v513_v26  ;;  %v548_v29 = vmul.f32 %v1713_v24, %v513_v26  ;;  %v653_v24 = vmax.f32 %v621_v25, %v637_v41  ;;  %v887_v25 = vpop.permute.xlu0 %886 }
  0xd8   : > { %v563_v33 = vadd.f32 %v547_v62, %v481_v27  ;;  %v564_v35 = vadd.f32 %v548_v29, %v482_v28 }
  0xda   : > { %v627_v52 = vadd.f32 %v611_v36, %v563_v33  ;;  %v628_v18 = vadd.f32 %v611_v36, %v564_v35  ;;  %v601_v13 = vpop.permute.xlu1 %600  ;;  %v1015_v26 = vpop.permute.xlu0 %1014 }
  0xdb   : > { %v623_v44 = vadd.f32 %v601_v13, %v559_v39  ;;  %v624_v15 = vadd.f32 %v601_v13, %v560_v40 }
  0xdc   : > { %v643_v50 = vmul.f32 0.2, %v627_v52  ;;  %v644_v46 = vmul.f32 0.2, %v628_v18 }
  0xdd   : > { %v639_v45 = vmul.f32 0.2, %v623_v44  ;;  %v640_v16 = vmul.f32 0.2, %v624_v15 }
  0xde   : > { %v606_v23 = vpop.permute.xlu1 %605  ;;  %v660_v7 = vmax.f32 %v628_v18, %v644_v46  ;;  %v659_v8 = vmax.f32 %v627_v52, %v643_v50  ;;  %v897_v28 = vpop.permute.xlu0 %896 }
  0xdf   : > { %v655_v54 = vmax.f32 %v623_v44, %v639_v45  ;;  %v656_v57 = vmax.f32 %v624_v15, %v640_v16  ;;  %v625_v58 = vadd.f32 %v606_v23, %v561_v47  ;;  %v626_v59 = vadd.f32 %v606_v23, %v562_v48 }
  0xe1   : > { %v641_v61 = vmul.f32 0.2, %v625_v58  ;;  %v642_v63 = vmul.f32 0.2, %v626_v59  ;;  %v682_v0 = vpack.c.bf16 %v656_v57, %v654_v34  ;;  %v681_v1 = vpack.c.bf16 %v655_v54, %v653_v24 }
  0xe2   : > { %v882_v22 = vpop.permute.xlu1 %881  ;;  %v1025_v29 = vpop.permute.xlu0 %1024 }
  0xe3   : > { %v657_v3 = vmax.f32 %v625_v58, %v641_v61  ;;  %v658_v4 = vmax.f32 %v626_v59, %v642_v63  ;;  %754 = vmatprep.subr.bf16.mxu0 %v682_v0 }
  0xe4   : > { %755 = vmatpush1.bf16.msra.mxu0 %v681_v1 }
  0xe5   : > { %v684_v56 = vpack.c.bf16 %v660_v7, %v658_v4  ;;  %v683_v10 = vpack.c.bf16 %v659_v8, %v657_v3 }
  0xe6   : > { %v1010_v9 = vpop.permute.xlu1 %1009  ;;  %v1812_v30 = vpop.permute.xlu0 %906 }
  0xe7   : > { %756 = vmatprep.subr.bf16.mxu0 %v684_v56 }
  0xe8   : > { %757 = vmatpush1.bf16.msra.mxu0 %v683_v10 }
  0xea   : > { %v892_v27 = vpop.permute.xlu1 %891  ;;  %v1814_v2 = vpop.permute.xlu0 %1034 }
  0xeb   : > { %1361 = vmatmul.mubr.msk.bf16.vlgmr.msra.gmra.mrb[0].mxu0 %vm725_vm0, %v1415_v11 }
  0xec   : > { %792 = vmatprep.mubr.bf16.mxu0 %v1449_v5 }
  0xee   : > { %v1020_v62 = vpop.permute.xlu1 %1019  ;;  %v1818_v18 = vpop.permute.xlu0 %916 }
  0xf2   : > { %v902_v53 = vpop.permute.xlu1 %901  ;;  %v1045_v61 = vpop.permute.xlu0 %1044 }
  0xf3   : > { %1362 = vmatmul.mubr.msk.bf16.gmra.mrb[4].mxu0 %vm725_vm0, %v1416_v60 }
  0xf4   : > { %802 = vmatprep.mubr.bf16.mxu0 %v1449_v5 }
  0xf6   : > { %v1030_v31 = vpop.permute.xlu1 %1029 }
  0xfa   : > { %v1816_v39 = vpop.permute.xlu1 %911 }
  0xfb   : > { %1363 = vmatmul.mubr.msk.bf16.gmra.mrb[8].mxu0 %vm725_vm0, %v1417_v12 }
  0xfc   : > { %812 = vmatprep.mubr.bf16.mxu0 %v1449_v5 }
  0xfe   : > { %v1820_v50 = vpop.permute.xlu1 %1039 }
 0x102   : > { %v1822_v10 = vpop.permute.xlu1 %921 }
 0x103   : > { %1364 = vmatmul.mubr.msk.bf16.gmra.mrb[12].mxu0 %vm725_vm0, %v1418_v17 }
 0x104   : > { %822 = vmatprep.mubr.bf16.mxu0 %v1449_v5 }
 0x10b   : > { %1365 = vmatmul.mubr.msk.bf16.gmra.mrb[16].mxu0 %vm725_vm0, %v1419_v19 }
 0x10c   : > { %832 = vmatprep.mubr.bf16.mxu0 %v1449_v5 }
 0x113   : > { %1366 = vmatmul.mubr.msk.bf16.gmra.mrb[20].mxu0 %vm725_vm0, %v1420_v20 }
 0x114   : > { %842 = vmatprep.mubr.bf16.mxu0 %v1449_v5 }
 0x11b   : > { %1367 = vmatmul.mubr.msk.bf16.gmra.mrb[24].mxu0 %vm725_vm0, %v1421_v6  ;;  %v1824_v6 = vpop.permute.xlu0 %926 }
 0x11c   : > { %852 = vmatprep.mubr.bf16.mxu0 %v1449_v5 }
 0x123   : > { %1368 = vmatmul.mubr.msk.bf16.gmra.mrb[28].mxu0 %vm725_vm0, %v1422_v21 }
 0x1be   : > { %v784_v5 = vpop.f32.mrb[0].mxu0 }
 0x1bf   : > { %v959_v49 = vmul.f32 %v882_v22, %v784_v5  ;;  %v786_v32 = vpop.f32.mrb[1].mxu0 }
 0x1c0   : > { %v960_v33 = vmul.f32 %v882_v22, %v786_v32  ;;  %v788_v35 = vpop.f32.mrb[2].mxu0 }
 0x1c1   : > { %v1087_v36 = vadd.f32 %v1010_v9, %v959_v49  ;;  %v961_v38 = vmul.f32 %v887_v25, %v788_v35  ;;  %v790_v37 = vpop.f32.mrb[3].mxu0  ;;  %v1050_v35 = vpop.permute.xlu1 %1049 }
 0x1c2   : > { %v1088_v40 = vadd.f32 %v1010_v9, %v960_v33  ;;  %v962_v41 = vmul.f32 %v887_v25, %v790_v37 }
 0x1c3   : > { %v1119_v42 = vmul.f32 0.2, %v1087_v36  ;;  %v1089_v52 = vadd.f32 %v1015_v26, %v961_v38 }
 0x1c4   : > { %v1090_v13 = vadd.f32 %v1015_v26, %v962_v41  ;;  %v1120_v43 = vmul.f32 0.2, %v1088_v40 }
 0x1c5   : > { %v1121_v14 = vmul.f32 0.2, %v1089_v52  ;;  %v1151_v47 = vmax.f32 %v1087_v36, %v1119_v42 }
 0x1c6   : > { %v794_v44 = vpop.f32.mrb[4].mxu0  ;;  %v1122_v15 = vmul.f32 0.2, %v1090_v13  ;;  %v1152_v34 = vmax.f32 %v1088_v40, %v1120_v43 }
 0x1c7   : > { %v963_v45 = vmul.f32 %v892_v27, %v794_v44  ;;  %v796_v16 = vpop.f32.mrb[5].mxu0  ;;  %v1153_v48 = vmax.f32 %v1089_v52, %v1121_v14 }
 0x1c8   : > { %v964_v46 = vmul.f32 %v892_v27, %v796_v16  ;;  %v798_v23 = vpop.f32.mrb[6].mxu0  ;;  %v1154_v24 = vmax.f32 %v1090_v13, %v1122_v15 }
 0x1c9   : > { %v1091_v54 = vadd.f32 %v1020_v62, %v963_v45  ;;  %v965_v57 = vmul.f32 %v897_v28, %v798_v23  ;;  %v800_v58 = vpop.f32.mrb[7].mxu0  ;;  %v1184_v59 = vpack.c.bf16 %v1153_v48, %v1151_v47  ;;  %v932_v47 = vpop.permute.xlu1 %931 }
 0x1ca   : > { %v1092_v63 = vadd.f32 %v1020_v62, %v964_v46  ;;  %v966_v0 = vmul.f32 %v897_v28, %v800_v58  ;;  %v1185_v1 = vpack.c.bf16 %v1154_v24, %v1152_v34 }
 0x1cb   : > { %v1123_v3 = vmul.f32 0.2, %v1091_v54  ;;  %v1093_v4 = vadd.f32 %v1025_v29, %v965_v57 }
 0x1cc   : > { %v1124_v7 = vmul.f32 0.2, %v1092_v63  ;;  %v1094_v8 = vadd.f32 %v1025_v29, %v966_v0  ;;  %1200 = vmatprep.subr.bf16.mxu1 %v1185_v1 }
 0x1cd   : > { %v1125_v56 = vmul.f32 0.2, %v1093_v4  ;;  %1201 = vmatpush1.bf16.msra.mxu1 %v1184_v59  ;;  %v1155_v12 = vmax.f32 %v1091_v54, %v1123_v3 }
 0x1ce   : > { %v1126_v11 = vmul.f32 0.2, %v1094_v8  ;;  %v804_v60 = vpop.f32.mrb[8].mxu0  ;;  %v1156_v21 = vmax.f32 %v1092_v63, %v1124_v7  ;;  %v1060_v7 = vpop.permute.xlu1 %1059 }
 0x1cf   : > { %v1157_v17 = vmax.f32 %v1093_v4, %v1125_v56  ;;  %v967_v19 = vmul.f32 %v902_v53, %v804_v60  ;;  %v806_v20 = vpop.f32.mrb[9].mxu0 }
 0x1d0   : > { %v1158_v22 = vmax.f32 %v1094_v8, %v1126_v11  ;;  %v968_v25 = vmul.f32 %v902_v53, %v806_v20  ;;  %v808_v9 = vpop.f32.mrb[10].mxu0  ;;  %v1055_v53 = vpop.permute.xlu0 %1054 }
 0x1d1   : > { %v1095_v26 = vadd.f32 %v1030_v31, %v967_v19  ;;  %v969_v27 = vmul.f32 %v1812_v30, %v808_v9  ;;  %v810_v28 = vpop.f32.mrb[11].mxu0  ;;  %v1186_v62 = vpack.c.bf16 %v1157_v17, %v1155_v12 }
 0x1d2   : > { %v1096_v29 = vadd.f32 %v1030_v31, %v968_v25  ;;  %v970_v5 = vmul.f32 %v1812_v30, %v810_v28  ;;  %v1187_v49 = vpack.c.bf16 %v1158_v22, %v1156_v21  ;;  %v942_v28 = vpop.permute.xlu1 %941 }
 0x1d3   : > { %v1127_v32 = vmul.f32 0.2, %v1095_v26  ;;  %v1097_v33 = vadd.f32 %v1814_v2, %v969_v27 }
 0x1d4   : > { %v1128_v36 = vmul.f32 0.2, %v1096_v29  ;;  %v1098_v38 = vadd.f32 %v1814_v2, %v970_v5  ;;  %1202 = vmatprep.subr.bf16.mxu1 %v1187_v49  ;;  %v937_v54 = vpop.permute.xlu0 %936 }
 0x1d5   : > { %v1129_v37 = vmul.f32 0.2, %v1097_v33  ;;  %1203 = vmatpush1.bf16.msra.mxu1 %v1186_v62  ;;  %v1159_v42 = vmax.f32 %v1095_v26, %v1127_v32 }
 0x1d6   : > { %v1130_v40 = vmul.f32 0.2, %v1098_v38  ;;  %v814_v41 = vpop.f32.mrb[12].mxu0  ;;  %v1160_v30 = vmax.f32 %v1096_v29, %v1128_v36 }
 0x1d7   : > { %v1161_v52 = vmax.f32 %v1097_v33, %v1129_v37  ;;  %v971_v31 = vmul.f32 %v1816_v39, %v814_v41  ;;  %v816_v13 = vpop.f32.mrb[13].mxu0 }
 0x1d8   : > { %v1162_v43 = vmax.f32 %v1098_v38, %v1130_v40  ;;  %v972_v14 = vmul.f32 %v1816_v39, %v816_v13  ;;  %v818_v44 = vpop.f32.mrb[14].mxu0  ;;  %v1065_v17 = vpop.permute.xlu0 %1064 }
 0x1d9   : > { %v1099_v15 = vadd.f32 %v1820_v50, %v971_v31  ;;  %v973_v2 = vmul.f32 %v1818_v18, %v818_v44  ;;  %v820_v45 = vpop.f32.mrb[15].mxu0  ;;  %v1188_v16 = vpack.c.bf16 %v1161_v52, %v1159_v42 }
 0x1da   : > { %v1100_v48 = vadd.f32 %v1820_v50, %v972_v14  ;;  %v974_v46 = vmul.f32 %v1818_v18, %v820_v45  ;;  %v1189_v23 = vpack.c.bf16 %v1162_v43, %v1160_v30  ;;  %v1070_v43 = vpop.permute.xlu1 %1069 }
 0x1db   : > { %v1131_v34 = vmul.f32 0.2, %v1099_v15  ;;  %v1101_v24 = vadd.f32 %v1045_v61, %v973_v2 }
 0x1dc   : > { %v1132_v57 = vmul.f32 0.2, %v1100_v48  ;;  %v1102_v58 = vadd.f32 %v1045_v61, %v974_v46  ;;  %1204 = vmatprep.subr.bf16.mxu1 %v1189_v23  ;;  %v947_v33 = vpop.permute.xlu0 %946 }
 0x1dd   : > { %v1133_v39 = vmul.f32 0.2, %v1101_v24  ;;  %1205 = vmatpush1.bf16.msra.mxu1 %v1188_v16  ;;  %v1163_v0 = vmax.f32 %v1099_v15, %v1131_v34 }
 0x1de   : > { %v1134_v59 = vmul.f32 0.2, %v1102_v58  ;;  %v824_v63 = vpop.f32.mrb[16].mxu0  ;;  %v1164_v50 = vmax.f32 %v1100_v48, %v1132_v57 }
 0x1df   : > { %v1165_v1 = vmax.f32 %v1101_v24, %v1133_v39  ;;  %v975_v3 = vmul.f32 %v1822_v10, %v824_v63  ;;  %v826_v4 = vpop.f32.mrb[17].mxu0 }
 0x1e0   : > { %v1166_v8 = vmax.f32 %v1102_v58, %v1134_v59  ;;  %v976_v18 = vmul.f32 %v1822_v10, %v826_v4  ;;  %v828_v56 = vpop.f32.mrb[18].mxu0  ;;  %v1075_v2 = vpop.permute.xlu0 %1074 }
 0x1e1   : > { %v1103_v11 = vadd.f32 %v1050_v35, %v975_v3  ;;  %v977_v60 = vmul.f32 %v1824_v6, %v828_v56  ;;  %v830_v61 = vpop.f32.mrb[19].mxu0  ;;  %v1190_v12 = vpack.c.bf16 %v1165_v1, %v1163_v0  ;;  %v952_v0 = vpop.permute.xlu1 %951 }
 0x1e2   : > { %v1104_v19 = vadd.f32 %v1050_v35, %v976_v18  ;;  %v978_v20 = vmul.f32 %v1824_v6, %v830_v61  ;;  %v1191_v21 = vpack.c.bf16 %v1166_v8, %v1164_v50 }
 0x1e3   : > { %v1135_v22 = vmul.f32 0.2, %v1103_v11  ;;  %v1105_v25 = vadd.f32 %v1055_v53, %v977_v60 }
 0x1e4   : > { %v1136_v9 = vmul.f32 0.2, %v1104_v19  ;;  %v1106_v26 = vadd.f32 %v1055_v53, %v978_v20  ;;  %1206 = vmatprep.subr.bf16.mxu1 %v1191_v21  ;;  %v957_v8 = vpop.permute.xlu0 %956 }
 0x1e5   : > { %v1137_v27 = vmul.f32 0.2, %v1105_v25  ;;  %1207 = vmatpush1.bf16.msra.mxu1 %v1190_v12  ;;  %v1167_v29 = vmax.f32 %v1103_v11, %v1135_v22  ;;  %v1080_v21 = vpop.permute.xlu1 %1079 }
 0x1e6   : > { %v1138_v10 = vmul.f32 0.2, %v1106_v26  ;;  %v834_v62 = vpop.f32.mrb[20].mxu0  ;;  %v1168_v36 = vmax.f32 %v1104_v19, %v1136_v9 }
 0x1e7   : > { %v1169_v5 = vmax.f32 %v1105_v25, %v1137_v27  ;;  %v979_v49 = vmul.f32 %v932_v47, %v834_v62  ;;  %v836_v32 = vpop.f32.mrb[21].mxu0 }
 0x1e8   : > { %v1170_v35 = vmax.f32 %v1106_v26, %v1138_v10  ;;  %v980_v38 = vmul.f32 %v932_v47, %v836_v32  ;;  %v838_v6 = vpop.f32.mrb[22].mxu0 }
 0x1e9   : > { %v1107_v37 = vadd.f32 %v1060_v7, %v979_v49  ;;  %v981_v40 = vmul.f32 %v937_v54, %v838_v6  ;;  %v840_v41 = vpop.f32.mrb[23].mxu0  ;;  %v1192_v42 = vpack.c.bf16 %v1169_v5, %v1167_v29  ;;  %v1085_v29 = vpop.permute.xlu0 %1084 }
 0x1ea   : > { %v1108_v53 = vadd.f32 %v1060_v7, %v980_v38  ;;  %v982_v52 = vmul.f32 %v937_v54, %v840_v41  ;;  %v1193_v31 = vpack.c.bf16 %v1170_v35, %v1168_v36 }
 0x1eb   : > { %v1139_v13 = vmul.f32 0.2, %v1107_v37  ;;  %v1109_v30 = vadd.f32 %v1065_v17, %v981_v40 }
 0x1ec   : > { %v1140_v14 = vmul.f32 0.2, %v1108_v53  ;;  %v1110_v44 = vadd.f32 %v1065_v17, %v982_v52  ;;  %1208 = vmatprep.subr.bf16.mxu1 %v1193_v31 }
 0x1ed   : > { %v1141_v15 = vmul.f32 0.2, %v1109_v30  ;;  %1209 = vmatpush1.bf16.msra.mxu1 %v1192_v42  ;;  %v1171_v47 = vmax.f32 %v1107_v37, %v1139_v13  ;;  %v1183_v13 = vld [vmem:[%s1864_s6] sm:$0xf] }
 0x1ee   : > { %v1142_v45 = vmul.f32 0.2, %v1110_v44  ;;  %v844_v16 = vpop.f32.mrb[24].mxu0  ;;  %v1172_v34 = vmax.f32 %v1108_v53, %v1140_v14 }
 0x1ef   : > { %v1173_v48 = vmax.f32 %v1109_v30, %v1141_v15  ;;  %v983_v46 = vmul.f32 %v942_v28, %v844_v16  ;;  %v846_v23 = vpop.f32.mrb[25].mxu0  ;;  %v1450_v30 = vmov 1966171168  }
 0x1f0   : > { %v1174_v24 = vmax.f32 %v1110_v44, %v1142_v45  ;;  %v984_v57 = vmul.f32 %v942_v28, %v846_v23  ;;  %v848_v54 = vpop.f32.mrb[26].mxu0 }
 0x1f1   : > { %v1111_v58 = vadd.f32 %v1070_v43, %v983_v46  ;;  %v985_v39 = vmul.f32 %v947_v33, %v848_v54  ;;  %v850_v59 = vpop.f32.mrb[27].mxu0  ;;  %v1194_v63 = vpack.c.bf16 %v1173_v48, %v1171_v47 }
 0x1f2   : > { %v1112_v1 = vadd.f32 %v1070_v43, %v984_v57  ;;  %v986_v3 = vmul.f32 %v947_v33, %v850_v59  ;;  %v1195_v4 = vpack.c.bf16 %v1174_v24, %v1172_v34  ;;  %v1245_v43 = vunpack.c.l.s4 %v1450_v30 }
 0x1f3   : > { %v1143_v7 = vmul.f32 0.2, %v1111_v58  ;;  %v1113_v50 = vadd.f32 %v1075_v2, %v985_v39 }
 0x1f4   : > { %v1144_v18 = vmul.f32 0.2, %v1112_v1  ;;  %v1114_v56 = vadd.f32 %v1075_v2, %v986_v3  ;;  %1210 = vmatprep.subr.bf16.mxu1 %v1195_v4  ;;  %v1246_v14 = vunpack.c.0.s8 %v1245_v43 }
 0x1f5   : > { %v1145_v11 = vmul.f32 0.2, %v1113_v50  ;;  %1211 = vmatpush1.bf16.msra.mxu1 %v1194_v63  ;;  %v1175_v12 = vmax.f32 %v1111_v58, %v1143_v7 }
 0x1f6   : > { %v1146_v60 = vmul.f32 0.2, %v1114_v56  ;;  %v854_v61 = vpop.f32.mrb[28].mxu0  ;;  %v1176_v22 = vmax.f32 %v1112_v1, %v1144_v18  ;;  %v1249_v15 = vsub.s32 %v1246_v14, %v1673_v55 }
 0x1f7   : > { %v1177_v17 = vmax.f32 %v1113_v50, %v1145_v11  ;;  %v987_v19 = vmul.f32 %v952_v0, %v854_v61  ;;  %v856_v20 = vpop.f32.mrb[29].mxu0 }
 0x1f8   : > { %v1178_v25 = vmax.f32 %v1114_v56, %v1146_v60  ;;  %v988_v9 = vmul.f32 %v952_v0, %v856_v20  ;;  %v858_v26 = vpop.f32.mrb[30].mxu0 }
 0x1f9   : > { %v1115_v27 = vadd.f32 %v1080_v21, %v987_v19  ;;  %v989_v28 = vmul.f32 %v957_v8, %v858_v26  ;;  %v860_v10 = vpop.f32.mrb[31].mxu0  ;;  %v1196_v62 = vpack.c.bf16 %v1177_v17, %v1175_v12 }
 0x1fa   : > { %v1116_v5 = vadd.f32 %v1080_v21, %v988_v9  ;;  %v990_v49 = vmul.f32 %v957_v8, %v860_v10  ;;  %v1197_v32 = vpack.c.bf16 %v1178_v25, %v1176_v22 }
 0x1fb   : > { %v1147_v33 = vmul.f32 0.2, %v1115_v27  ;;  %v1117_v36 = vadd.f32 %v1085_v29, %v989_v28 }
 0x1fc   : > { %v1148_v35 = vmul.f32 0.2, %v1116_v5  ;;  %v1118_v38 = vadd.f32 %v1085_v29, %v990_v49  ;;  %1212 = vmatprep.subr.bf16.mxu1 %v1197_v32 }
 0x1fd   : > { %v1149_v6 = vmul.f32 0.2, %v1117_v36  ;;  %1213 = vmatpush1.bf16.msra.mxu1 %v1196_v62  ;;  %v1179_v40 = vmax.f32 %v1115_v27, %v1147_v33 }
 0x1fe   : > { %v1150_v37 = vmul.f32 0.2, %v1118_v38  ;;  %v1180_v42 = vmax.f32 %v1116_v5, %v1148_v35 }
 0x1ff   : > { %v1181_v41 = vmax.f32 %v1117_v36, %v1149_v6 }
 0x200   : > { %v1182_v53 = vmax.f32 %v1118_v38, %v1150_v37 }
 0x201   : > { %v1198_v52 = vpack.c.bf16 %v1181_v41, %v1179_v40 }
 0x202   : > { %v1199_v31 = vpack.c.bf16 %v1182_v53, %v1180_v42 }
 0x204   : > { %1214 = vmatprep.subr.bf16.mxu1 %v1199_v31 }
 0x205   : > { %1215 = vmatpush1.bf16.msra.mxu1 %v1198_v52 }
 0x208   : > { %1233 = vmatmul.mubr.bf16.vlgmr.msra.gmra.mrb[0].mxu1 %v1183_v13 }
 0x2db   : > { %v1234_v44 = vpop.f32.mrb[0].mxu1 }
 0x2dc   : > { %v1236_v2 = vpop.f32.mrb[1].mxu1 }
 0x2dd   : > { %v1243_v45 = vcombine.low %v1234_v44, %v1236_v2  ;;  %v1238_v16 = vpop.f32.mrb[2].mxu1 }
 0x2de   : > { %v1239_v47 = vpop.f32.mrb[3].mxu1 }
 0x2df   : > { %v1250_v48 = vrot.slane %v1243_v45, %v1249_v15 }
 0x2e1   : > { %v1257_v46 = vrot.slane %v1250_v48, %v1249_v15 }
 0x2e3   : > { %1263 = vst.msk [vmem:[%s314_s12] sm:$0x3] %vm1261_vm1, %v1257_v46 }
 0x2e4 PF: > { %s17_s26 = sadd.s32 1, %s1445_s26   ;;  %s1866_s24 = smov %s1441_s25 }
 0x2e5   : > { %p14_p5 = scmp.ge.s32.totalorder %s17_s26, 4   ;;  %s1867_s25 = smov %s1869_s27 }
 0x2e7   :  { %16 = sbr.rel (!%p14_p5) target bundleno = 2 (0x2), region = 78 }

</bundles_post_ra>
